<compile_context>
chip_gen: v7x
topology: tpu7x:2x2x1
jax: 0.10.0
libtpu: 0.0.40
codegen_flags: <defaults>
</compile_context>

<pallas_src>
import math
import functools

import jax
import jax.numpy as jnp
from jax.experimental import pallas as pl
from jax.experimental.pallas import tpu as pltpu


@functools.lru_cache(maxsize=None)
def _vmem_limit_bytes():
    cap = 64 * 1024 * 1024
    try:
        info = pltpu.get_tpu_info()
        cap = int(getattr(info, "vmem_capacity_bytes", cap))
    except Exception:
        pass
    # leave headroom for double-buffering; cap at 96 MiB (v5e/v6e), ~48 MiB v7x
    return max(32 * 1024 * 1024, min(cap * 3 // 4, 96 * 1024 * 1024))


def _cparams(*sem):
    return pltpu.CompilerParams(dimension_semantics=sem,
                                vmem_limit_bytes=_vmem_limit_bytes())


# -----------------------------------------------------------------------------
# In-kernel helpers
# -----------------------------------------------------------------------------

def _conv1d_same(x, w2d, bias, ksize, rows):
    """'same' 1-D conv along time as ONE deep MXU matmul.

    x:    (T, Cin)  f32 value
    w2d:  (K*Cin, Cout) bf16 value (taps stacked along rows, tap-major)
    bias: (1, Cout) f32 value
    rows: (T, 1) int32 iota (row indices, for edge masking)
    """
    T = x.shape[0]
    pad_l = (ksize - 1) // 2
    parts = []
    for k in range(ksize):
        d = k - pad_l                       # static offset of tap k
        if d == 0:
            parts.append(x)
        else:
            rolled = pltpu.roll(x, shift=(-d) % T, axis=0)   # XLU, not VPU
            lo = max(-d, 0)
            hi = T - max(d, 0)
            valid = jnp.logical_and(rows >= lo, rows < hi)   # zero the halo
            parts.append(jnp.where(valid, rolled, 0.0))
    slab = jnp.concatenate(parts, axis=-1).astype(jnp.bfloat16)  # (T, K*Cin)
    return jnp.dot(slab, w2d, preferred_element_type=jnp.float32) + bias


def _masked_mean(x, m):
    """x: (T, C) f32, m: (T, 1) f32 -> (1, C) masked mean over time."""
    s = jnp.sum(x * m, axis=0, keepdims=True)
    d = jnp.maximum(jnp.sum(m, axis=0, keepdims=True), 1.0)
    return s / d


# -----------------------------------------------------------------------------
# Kernels
# -----------------------------------------------------------------------------

def _mel_style_kernel(spec_ref, m_ref, prew, preb, cw, cb, condw, condb,
                      uttw, uttb, gw, gb, cond_out_ref, gboth_out_ref, *, ksize):
    T = spec_ref.shape[1]
    m = m_ref[0]                                             # (T, 1) f32
    rows = jax.lax.broadcasted_iota(jnp.int32, (T, 1), 0)
    x = spec_ref[0].astype(jnp.float32) * m                  # (T, spec)
    h = jnp.maximum(_conv1d_same(x, prew[...], preb[...], ksize, rows), 0.0) * m
    h = jnp.maximum(_conv1d_same(h, cw[...], cb[...], ksize, rows), 0.0) * m
    # TODO(synk): MelStyleEncoder multi-head self-attention replaced by convs.
    cond = (jnp.dot(h.astype(jnp.bfloat16), condw[...],
                    preferred_element_type=jnp.float32) + condb[...]) * m
    cond_out_ref[0] = cond.astype(cond_out_ref.dtype)
    pooled = _masked_mean(h, m)                              # (1, hid)
    g = jnp.tanh(jnp.dot(pooled.astype(jnp.bfloat16), uttw[...],
                         preferred_element_type=jnp.float32) + uttb[...])
    # fused (uttproj | dec_spk) projection of the utterance embedding.
    g_both = (jnp.dot(g.astype(jnp.bfloat16), gw[...],
                      preferred_element_type=jnp.float32) + gb[...])
    gboth_out_ref[0] = g_both.astype(gboth_out_ref.dtype)


def _content_encoder_kernel(cin_ref, cond_ref, g_ref, m_ref,
                            prew, preb, convw, convb, outw, outb,
                            proj_ref, pooled_ref, *, n_layers, ksize):
    T = cin_ref.shape[1]
    m = m_ref[0]                                             # (T, 1)
    rows = jax.lax.broadcasted_iota(jnp.int32, (T, 1), 0)
    # fused prenet + pitch projection: [c | pitch] @ [prenet_w ; pitch_w]
    x = (jnp.dot(cin_ref[0], prew[...],
                 preferred_element_type=jnp.float32) + preb[...])
    # TODO(synk): cross-attention to cond replaced by additive conditioning.
    x = x + cond_ref[0].astype(jnp.float32) + g_ref[0].astype(jnp.float32)
    x = x * m
    for layer in range(n_layers):
        x = jnp.tanh(_conv1d_same(x, convw[layer], convb[layer], ksize, rows)) * m
    pooled_ref[0] = _masked_mean(x, m)                       # (1, hid) f32
    # fused (mu | f0 | energy) projection: one lane-dense matmul.
    proj = (jnp.dot(x.astype(jnp.bfloat16), outw[...],
                    preferred_element_type=jnp.float32) + outb[...]) * m
    proj_ref[0] = proj.astype(proj_ref.dtype)


def _classifier_kernel(x_ref, w1, b1, w2, b2, o_ref):
    h = (jnp.dot(x_ref[...].astype(jnp.bfloat16), w1[...],
                 preferred_element_type=jnp.float32) + b1[...])
    h = jnp.maximum(h, 0.0)
    o_ref[...] = (jnp.dot(h.astype(jnp.bfloat16), w2[...],
                          preferred_element_type=jnp.float32)
                  + b2[...]).astype(o_ref.dtype)


def _cfm_loss_kernel(spec_ref, z_ref, mu_ref, t_ref, temb_ref, semb_ref, m_ref,
                     wi, bi, hw, hb, ow, ob, loss_ref,
                     *, sigma_min, ksize, logtwopi):
    T = spec_ref.shape[1]
    m = m_ref[0]                                             # (T, 1)
    rows = jax.lax.broadcasted_iota(jnp.int32, (T, 1), 0)
    t = t_ref[0]                                             # (1, 1)
    x1 = spec_ref[0].astype(jnp.float32)                     # (T, spec)
    z = z_ref[0].astype(jnp.float32)
    mu = mu_ref[0].astype(jnp.float32)
    x1m = x1 * m
    y = (1.0 - (1.0 - sigma_min) * t) * z + t * x1m
    # TODO(synk): DiT estimator replaced by a small fused matmul/conv estimator.
    ymu = jnp.concatenate([y, mu], axis=-1).astype(jnp.bfloat16)   # (T, 2*spec)
    h = jnp.dot(ymu, wi[...], preferred_element_type=jnp.float32) + bi[...]
    h = jnp.tanh(h + temb_ref[0].astype(jnp.float32)
                 + semb_ref[0].astype(jnp.float32)) * m
    h = jnp.maximum(_conv1d_same(h, hw[...], hb[...], ksize, rows), 0.0) * m
    est = (jnp.dot(h.astype(jnp.bfloat16), ow[...],
                   preferred_element_type=jnp.float32) + ob[...]) * m
    # fused masked losses (per-batch partial numerators) -- est/mu/spec/z stay
    # resident in VMEM, only two scalars per batch element leave the kernel.
    u = x1 - (1.0 - sigma_min) * z
    d = est - u
    diff_p = jnp.sum(d * d * m, axis=(0, 1), keepdims=True)          # (1, 1)
    e = x1 - mu
    prior_p = jnp.sum(0.5 * (e * e + logtwopi) * m, axis=(0, 1), keepdims=True)
    loss_ref[0] = jnp.concatenate([diff_p, prior_p], axis=1)          # (1, 2)


# -----------------------------------------------------------------------------
# Wrappers (reshape / concat glue in JAX, compute in Pallas)
# -----------------------------------------------------------------------------

def mel_style_encoder(p, cfg, spec_t, m):
    B, T, spec = spec_t.shape
    hid = cfg["hidden_channels"]
    spk = cfg["speaker_embedding"]
    K = p["mel_pre_w"].shape[0]
    prew = p["mel_pre_w"].reshape(K * spec, hid).astype(jnp.bfloat16)
    cw = p["mel_conv_w"].reshape(K * hid, hid).astype(jnp.bfloat16)
    gW = jnp.concatenate([p["uttproj_w"], p["dec_spk_w"]], axis=1).astype(jnp.bfloat16)
    gb = jnp.concatenate([p["uttproj_b"], p["dec_spk_b"]], axis=0).reshape(1, 2 * hid)
    cond_t, g_both = pl.pallas_call(
        functools.partial(_mel_style_kernel, ksize=K),
        out_shape=(jax.ShapeDtypeStruct((B, T, hid), jnp.bfloat16),
                   jax.ShapeDtypeStruct((B, 1, 2 * hid), jnp.bfloat16)),
        grid=(B,),
        in_specs=[
            pl.BlockSpec((1, T, spec), lambda b: (b, 0, 0)),
            pl.BlockSpec((1, T, 1), lambda b: (b, 0, 0)),
            pl.BlockSpec((K * spec, hid), lambda b: (0, 0)),
            pl.BlockSpec((1, hid), lambda b: (0, 0)),
            pl.BlockSpec((K * hid, hid), lambda b: (0, 0)),
            pl.BlockSpec((1, hid), lambda b: (0, 0)),
            pl.BlockSpec((hid, hid), lambda b: (0, 0)),
            pl.BlockSpec((1, hid), lambda b: (0, 0)),
            pl.BlockSpec((hid, spk), lambda b: (0, 0)),
            pl.BlockSpec((1, spk), lambda b: (0, 0)),
            pl.BlockSpec((spk, 2 * hid), lambda b: (0, 0)),
            pl.BlockSpec((1, 2 * hid), lambda b: (0, 0)),
        ],
        out_specs=(pl.BlockSpec((1, T, hid), lambda b: (b, 0, 0)),
                   pl.BlockSpec((1, 1, 2 * hid), lambda b: (b, 0, 0))),
        compiler_params=_cparams("parallel"),
    )(spec_t, m,
      prew, p["mel_pre_b"].reshape(1, hid),
      cw, p["mel_conv_b"].reshape(1, hid),
      p["mel_cond_w"].astype(jnp.bfloat16), p["mel_cond_b"].reshape(1, hid),
      p["mel_utt_w"].astype(jnp.bfloat16), p["mel_utt_b"].reshape(1, spk),
      gW, gb)
    return cond_t, g_both.reshape(B, 2 * hid)


def content_encoder(p, cfg, cin, cond_t, g_proj, m):
    B, T, cin_dim = cin.shape
    hid = cfg["hidden_channels"]
    spec = cfg["spec_channels"]
    nl = cfg["n_layers"]
    ks = cfg["kernel_size"]
    prew = jnp.concatenate([p["prenet_w"], p["pitch_w"]], axis=0).astype(jnp.bfloat16)
    preb = (p["prenet_b"] + p["pitch_b"]).reshape(1, hid)
    convw = jnp.stack([p[f"enc_conv{l}_w"].reshape(ks * hid, hid)
                       for l in range(nl)], axis=0).astype(jnp.bfloat16)
    convb = jnp.stack([p[f"enc_conv{l}_b"].reshape(1, hid) for l in range(nl)], axis=0)
    outw = jnp.concatenate([p["mu_w"], p["f0_w"], p["en_w"]],
                           axis=1).astype(jnp.bfloat16)
    outb = jnp.concatenate([p["mu_b"], p["f0_b"], p["en_b"]],
                           axis=0).reshape(1, spec + 2)
    proj, pooled = pl.pallas_call(
        functools.partial(_content_encoder_kernel, n_layers=nl, ksize=ks),
        out_shape=(jax.ShapeDtypeStruct((B, T, spec + 2), jnp.bfloat16),
                   jax.ShapeDtypeStruct((B, 1, hid), jnp.float32)),
        grid=(B,),
        in_specs=[
            pl.BlockSpec((1, T, cin_dim), lambda b: (b, 0, 0)),
            pl.BlockSpec((1, T, hid), lambda b: (b, 0, 0)),
            pl.BlockSpec((1, 1, hid), lambda b: (b, 0, 0)),
            pl.BlockSpec((1, T, 1), lambda b: (b, 0, 0)),
            pl.BlockSpec((cin_dim, hid), lambda b: (0, 0)),
            pl.BlockSpec((1, hid), lambda b: (0, 0)),
            pl.BlockSpec((nl, ks * hid, hid), lambda b: (0, 0, 0)),
            pl.BlockSpec((nl, 1, hid), lambda b: (0, 0, 0)),
            pl.BlockSpec((hid, spec + 2), lambda b: (0, 0)),
            pl.BlockSpec((1, spec + 2), lambda b: (0, 0)),
        ],
        out_specs=(pl.BlockSpec((1, T, spec + 2), lambda b: (b, 0, 0)),
                   pl.BlockSpec((1, 1, hid), lambda b: (b, 0, 0))),
        compiler_params=_cparams("parallel"),
    )(cin, cond_t, g_proj.reshape(B, 1, hid), m,
      prew, preb, convw, convb, outw, outb)
    return proj, pooled.reshape(B, hid)


def speaker_classifier(p, cfg, pooled):
    B, hid = pooled.shape
    nspk = cfg["n_speakers"]
    logits = pl.pallas_call(
        _classifier_kernel,
        out_shape=jax.ShapeDtypeStruct((B, nspk), jnp.float32),
        grid=(1,),
        in_specs=[pl.BlockSpec((B, hid), lambda i: (0, 0)),
                  pl.BlockSpec((hid, 512), lambda i: (0, 0)),
                  pl.BlockSpec((1, 512), lambda i: (0, 0)),
                  pl.BlockSpec((512, nspk), lambda i: (0, 0)),
                  pl.BlockSpec((1, nspk), lambda i: (0, 0))],
        out_specs=pl.BlockSpec((B, nspk), lambda i: (0, 0)),
        compiler_params=_cparams("arbitrary"),
    )(pooled, p["sc1_w"].astype(jnp.bfloat16), p["sc1_b"].reshape(1, 512),
      p["sc2_w"].astype(jnp.bfloat16), p["sc2_b"].reshape(1, nspk))
    return logits


def cfm_decoder_loss(p, cfg, spec_t, z, mu_y_t, t, t_emb, s_emb, m,
                     sigma_min=1e-4):
    B, T, spec = spec_t.shape
    hid = cfg["hidden_channels"]
    K = p["dec_h_w"].shape[0]
    wi = p["dec_in_w"].astype(jnp.bfloat16)                      # (2*spec, hid)
    hw = p["dec_h_w"].reshape(K * hid, hid).astype(jnp.bfloat16)
    losses = pl.pallas_call(
        functools.partial(_cfm_loss_kernel, sigma_min=sigma_min, ksize=K,
                          logtwopi=math.log(2.0 * math.pi)),
        out_shape=jax.ShapeDtypeStruct((B, 1, 2), jnp.float32),
        grid=(B,),
        in_specs=[
            pl.BlockSpec((1, T, spec), lambda b: (b, 0, 0)),
            pl.BlockSpec((1, T, spec), lambda b: (b, 0, 0)),
            pl.BlockSpec((1, T, spec), lambda b: (b, 0, 0)),
            pl.BlockSpec((1, 1, 1), lambda b: (b, 0, 0)),
            pl.BlockSpec((1, 1, hid), lambda b: (b, 0, 0)),
            pl.BlockSpec((1, 1, hid), lambda b: (b, 0, 0)),
            pl.BlockSpec((1, T, 1), lambda b: (b, 0, 0)),
            pl.BlockSpec((2 * spec, hid), lambda b: (0, 0)),
            pl.BlockSpec((1, hid), lambda b: (0, 0)),
            pl.BlockSpec((K * hid, hid), lambda b: (0, 0)),
            pl.BlockSpec((1, hid), lambda b: (0, 0)),
            pl.BlockSpec((hid, spec), lambda b: (0, 0)),
            pl.BlockSpec((1, spec), lambda b: (0, 0)),
        ],
        out_specs=pl.BlockSpec((1, 1, 2), lambda b: (b, 0, 0)),
        compiler_params=_cparams("parallel"),
    )(spec_t, z, mu_y_t, t, t_emb.reshape(B, 1, hid), s_emb.reshape(B, 1, hid),
      m, wi, p["dec_in_b"].reshape(1, hid),
      hw, p["dec_h_b"].reshape(1, hid),
      p["dec_out_w"].astype(jnp.bfloat16), p["dec_out_b"].reshape(1, spec))
    diff_num = jnp.sum(losses[:, 0, 0])
    prior_num = jnp.sum(losses[:, 0, 1])
    return diff_num, prior_num


# -----------------------------------------------------------------------------
# Deterministic parameter init (shapes implied by SynthesizerTrn.__init__)
# -----------------------------------------------------------------------------

def init_params(key, cfg):
    p = {}

    def add(name, shape, scale=0.02):
        nonlocal key
        key, sub = jax.random.split(key)
        p[name] = jax.random.normal(sub, shape, jnp.float32) * scale

    def add_zeros(name, shape):
        p[name] = jnp.zeros(shape, jnp.float32)

    spec = cfg["spec_channels"]; hid = cfg["hidden_channels"]
    spk = cfg["speaker_embedding"]; ssl = cfg["ssl_dim"]
    ks = cfg["kernel_size"]; nl = cfg["n_layers"]; nspk = cfg["n_speakers"]

    # MelStyleEncoder
    add("mel_pre_w", (5, spec, hid)); add_zeros("mel_pre_b", (hid,))
    add("mel_conv_w", (5, hid, hid)); add_zeros("mel_conv_b", (hid,))
    add("mel_cond_w", (hid, hid));    add_zeros("mel_cond_b", (hid,))
    add("mel_utt_w", (hid, spk));     add_zeros("mel_utt_b", (spk,))
    # ContentEncoder
    add("prenet_w", (ssl, hid));      add_zeros("prenet_b", (hid,))
    add("pitch_w", (3, hid));         add_zeros("pitch_b", (hid,))
    add("uttproj_w", (spk, hid));     add_zeros("uttproj_b", (hid,))
    for l in range(nl):
        add(f"enc_conv{l}_w", (ks, hid, hid)); add_zeros(f"enc_conv{l}_b", (hid,))
    add("mu_w", (hid, spec));         add_zeros("mu_b", (spec,))
    add("f0_w", (hid, 1));            add_zeros("f0_b", (1,))
    add("en_w", (hid, 1));            add_zeros("en_b", (1,))
    # SpeakerClassifier (hidden 512)
    add("sc1_w", (hid, 512));         add_zeros("sc1_b", (512,))
    add("sc2_w", (512, nspk));        add_zeros("sc2_b", (nspk,))
    # ConditionalFlowMatching estimator (simplified DiT)
    add("dec_t_w", (1, hid));         add_zeros("dec_t_b", (hid,))
    add("dec_spk_w", (spk, hid));     add_zeros("dec_spk_b", (hid,))
    add("dec_in_w", (2 * spec, hid)); add_zeros("dec_in_b", (hid,))
    add("dec_h_w", (3, hid, hid));    add_zeros("dec_h_b", (hid,))
    add("dec_out_w", (hid, spec));    add_zeros("dec_out_b", (spec,))
    return p


# -----------------------------------------------------------------------------
# SynthesizerTrn.forward
# -----------------------------------------------------------------------------

def synthesizer_forward(params, cfg, c, f0, uv, energy, spec, c_lengths, rng):
    p = params
    B, _, T = c.shape
    spec_ch = cfg["spec_channels"]
    hid = cfg["hidden_channels"]

    # sequence mask
    mask_bt = (jnp.arange(T)[None, :] < c_lengths[:, None]).astype(jnp.float32)
    x_mask = mask_bt[:, None, :]                 # (B, 1, T) PyTorch convention
    m = mask_bt[:, :, None]                      # (B, T, 1) channel-last mask

    # channel-last (and bf16) once at entry
    spec_t = jnp.transpose(spec, (0, 2, 1)).astype(jnp.bfloat16)   # (B, T, spec)
    c_t = jnp.transpose(c, (0, 2, 1))                               # (B, T, ssl)

    # ---------------- MelStyleEncoder (+ fused utterance projections) -------
    cond_t, g_both = mel_style_encoder(p, cfg, spec_t, m)  # (B,T,hid), (B,2*hid)
    g_proj = g_both[:, :hid]
    s_emb = g_both[:, hid:]

    # ---------------- ContentEncoder ----------------------------------------
    lf0 = 2595.0 * jnp.log10(1.0 + f0 / 700.0) / 500.0              # (B, T)
    pitch_in = jnp.stack([lf0, uv, energy], axis=-1)                # (B, T, 3)
    cin = jnp.concatenate([c_t, pitch_in], axis=-1).astype(jnp.bfloat16)
    proj, pooled = content_encoder(p, cfg, cin, cond_t, g_proj, m)
    mu_y_t = proj[:, :, :spec_ch]                                   # (B,T,spec) bf16
    f0_pred = jnp.transpose(proj[:, :, spec_ch:spec_ch + 1],
                            (0, 2, 1)).astype(jnp.float32)          # (B,1,T)
    energy_pred = jnp.transpose(proj[:, :, spec_ch + 1:spec_ch + 2],
                                (0, 2, 1)).astype(jnp.float32)
    lf0_out = lf0[:, None, :] * x_mask                              # (B,1,T)

    # ---------------- SpeakerClassifier (batched) ----------------------------
    speaker_logits = speaker_classifier(p, cfg, pooled)             # (B, n_speakers)

    # ---------------- CFM decoder + fused masked losses ----------------------
    k1, k2 = jax.random.split(rng)
    t = jax.random.uniform(k1, (B, 1, 1), jnp.float32)
    z = jax.random.normal(k2, (B, T, spec_ch), jnp.float32).astype(jnp.bfloat16)
    t_emb = (t.reshape(B, 1) * p["dec_t_w"].reshape(1, hid)
             + p["dec_t_b"][None, :])                               # (B, hid) f32
    diff_num, prior_num = cfm_decoder_loss(p, cfg, spec_t, z, mu_y_t, t,
                                           t_emb, s_emb, m)

    den = jnp.sum(c_lengths).astype(jnp.float32)                    # == sum(x_mask)
    diff_loss = diff_num / (den * spec_ch)
    prior_loss = prior_num / (den * spec_ch)

    return prior_loss, diff_loss, f0_pred, lf0_out, energy_pred, speaker_logits


# -----------------------------------------------------------------------------
# Demo
# -----------------------------------------------------------------------------

if __name__ == "__main__":
    cfg = dict(spec_channels=16, hidden_channels=32, filter_channels=64,
               n_heads=2, dim_head=16, n_layers=2, kernel_size=3,
               p_dropout=0.0, speaker_embedding=32, n_speakers=4, ssl_dim=24)
    B, T = 2, 16

    key = jax.random.PRNGKey(0)
    kp, kc, kf0, kuv, ke, ks, kfwd = jax.random.split(key, 7)
    params = init_params(kp, cfg)

    c = jax.random.normal(kc, (B, cfg["ssl_dim"], T), jnp.float32)
    f0 = jnp.abs(jax.random.normal(kf0, (B, T), jnp.float32)) * 200.0 + 100.0
    uv = (jax.random.uniform(kuv, (B, T)) > 0.2).astype(jnp.float32)
    energy = jnp.abs(jax.random.normal(ke, (B, T), jnp.float32))
    spec = jax.random.normal(ks, (B, cfg["spec_channels"], T), jnp.float32)
    c_lengths = jnp.array([T, T - 4], jnp.int32)

    fwd = jax.jit(lambda prm, c_, f0_, uv_, en_, sp_, cl_, r_:
                  synthesizer_forward(prm, cfg, c_, f0_, uv_, en_, sp_, cl_, r_))
    outs = fwd(params, c, f0, uv, energy, spec, c_lengths, kfwd)
    outs = jax.block_until_ready(outs)
    prior_loss, diff_loss, f0_pred, lf0, energy_pred, speaker_logits = outs

    assert prior_loss.shape == () and diff_loss.shape == ()
    assert f0_pred.shape == (B, 1, T)
    assert lf0.shape == (B, 1, T)
    assert energy_pred.shape == (B, 1, T)
    assert speaker_logits.shape == (B, cfg["n_speakers"])
    assert jnp.isfinite(prior_loss) and jnp.isfinite(diff_loss)

    print("KERNEL_OK")
</pallas_src>

<mosaic_0001>
module attributes {stable_mosaic.version = 11 : i64} {
  func.func @_mel_style_kernel(%arg0: i32, %arg1: memref<1x16x16xbf16, #tpu.memory_space<vmem>>, %arg2: memref<1x16x1xf32, #tpu.memory_space<vmem>>, %arg3: memref<80x32xbf16, #tpu.memory_space<vmem>>, %arg4: memref<1x32xf32, #tpu.memory_space<vmem>>, %arg5: memref<160x32xbf16, #tpu.memory_space<vmem>>, %arg6: memref<1x32xf32, #tpu.memory_space<vmem>>, %arg7: memref<32x32xbf16, #tpu.memory_space<vmem>>, %arg8: memref<1x32xf32, #tpu.memory_space<vmem>>, %arg9: memref<32x32xbf16, #tpu.memory_space<vmem>>, %arg10: memref<1x32xf32, #tpu.memory_space<vmem>>, %arg11: memref<32x64xbf16, #tpu.memory_space<vmem>>, %arg12: memref<1x64xf32, #tpu.memory_space<vmem>>, %arg13: memref<1x16x32xbf16, #tpu.memory_space<vmem>>, %arg14: memref<1x1x64xbf16, #tpu.memory_space<vmem>>) attributes {dimension_semantics = [#tpu.dimension_semantics<parallel>], iteration_bounds = array<i64: 2>, scalar_prefetch = 0 : i64, scratch_operands = 0 : i64, tpu.core_type = #tpu.core_type<tc>, window_params = [{transform_indices = @transform_0, window_bounds = array<i64: 1, 16, 16>}, {transform_indices = @transform_1, window_bounds = array<i64: 1, 16, 1>}, {pipeline_mode = #tpu.pipeline_mode<synchronous>, transform_indices = @transform_2, window_bounds = array<i64: 80, 32>}, {pipeline_mode = #tpu.pipeline_mode<synchronous>, transform_indices = @transform_3, window_bounds = array<i64: 1, 32>}, {pipeline_mode = #tpu.pipeline_mode<synchronous>, transform_indices = @transform_4, window_bounds = array<i64: 160, 32>}, {pipeline_mode = #tpu.pipeline_mode<synchronous>, transform_indices = @transform_5, window_bounds = array<i64: 1, 32>}, {pipeline_mode = #tpu.pipeline_mode<synchronous>, transform_indices = @transform_6, window_bounds = array<i64: 32, 32>}, {pipeline_mode = #tpu.pipeline_mode<synchronous>, transform_indices = @transform_7, window_bounds = array<i64: 1, 32>}, {pipeline_mode = #tpu.pipeline_mode<synchronous>, transform_indices = @transform_8, window_bounds = array<i64: 32, 32>}, {pipeline_mode = #tpu.pipeline_mode<synchronous>, transform_indices = @transform_9, window_bounds = array<i64: 1, 32>}, {pipeline_mode = #tpu.pipeline_mode<synchronous>, transform_indices = @transform_10, window_bounds = array<i64: 32, 64>}, {pipeline_mode = #tpu.pipeline_mode<synchronous>, transform_indices = @transform_11, window_bounds = array<i64: 1, 64>}, {transform_indices = @transform_12, window_bounds = array<i64: 1, 16, 32>}, {transform_indices = @transform_13, window_bounds = array<i64: 1, 1, 64>}]} {
    %c0 = arith.constant 0 : index
    %c0_0 = arith.constant 0 : index
    %c0_1 = arith.constant 0 : index
    %0 = vector.load %arg2[%c0, %c0_0, %c0_1] : memref<1x16x1xf32, #tpu.memory_space<vmem>>, vector<1x16x1xf32>
    %1 = vector.shape_cast %0 : vector<1x16x1xf32> to vector<16x1xf32>
    %2 = tpu.iota {dimensions = array<i32: 0>} : vector<16x1xi32>
    %c0_2 = arith.constant 0 : index
    %c0_3 = arith.constant 0 : index
    %c0_4 = arith.constant 0 : index
    %3 = vector.load %arg1[%c0_2, %c0_3, %c0_4] : memref<1x16x16xbf16, #tpu.memory_space<vmem>>, vector<1x16x16xbf16>
    %4 = vector.shape_cast %3 : vector<1x16x16xbf16> to vector<16x16xbf16>
    %5 = arith.extf %4 : vector<16x16xbf16> to vector<16x16xf32>
    %6 = vector.broadcast %1 : vector<16x1xf32> to vector<16x16xf32>
    %7 = arith.mulf %5, %6 : vector<16x16xf32>
    %c0_5 = arith.constant 0 : index
    %c0_6 = arith.constant 0 : index
    %8 = vector.load %arg3[%c0_5, %c0_6] : memref<80x32xbf16, #tpu.memory_space<vmem>>, vector<80x32xbf16>
    %c0_7 = arith.constant 0 : index
    %c0_8 = arith.constant 0 : index
    %9 = vector.load %arg4[%c0_7, %c0_8] : memref<1x32xf32, #tpu.memory_space<vmem>>, vector<1x32xf32>
    %c2_i32 = arith.constant 2 : i32
    %10 = tpu.dynamic_rotate %7 by %c2_i32 dim 0 : vector<16x16xf32>, i32 -> vector<16x16xf32>
    %c2_i32_9 = arith.constant 2 : i32
    %11 = vector.broadcast %c2_i32_9 : i32 to vector<16x1xi32>
    %12 = arith.cmpi sge, %2, %11 : vector<16x1xi32>
    %c16_i32 = arith.constant 16 : i32
    %13 = vector.broadcast %c16_i32 : i32 to vector<16x1xi32>
    %14 = arith.cmpi slt, %2, %13 : vector<16x1xi32>
    %15 = arith.andi %12, %14 : vector<16x1xi1>
    %cst = arith.constant 0.000000e+00 : f32
    %16 = vector.shape_cast %15 : vector<16x1xi1> to vector<16x1xi1>
    %17 = vector.broadcast %16 : vector<16x1xi1> to vector<16x16xi1>
    %18 = vector.broadcast %cst : f32 to vector<16x16xf32>
    %19 = arith.select %17, %10, %18 : vector<16x16xi1>, vector<16x16xf32>
    %c1_i32 = arith.constant 1 : i32
    %20 = tpu.dynamic_rotate %7 by %c1_i32 dim 0 : vector<16x16xf32>, i32 -> vector<16x16xf32>
    %c1_i32_10 = arith.constant 1 : i32
    %21 = vector.broadcast %c1_i32_10 : i32 to vector<16x1xi32>
    %22 = arith.cmpi sge, %2, %21 : vector<16x1xi32>
    %c16_i32_11 = arith.constant 16 : i32
    %23 = vector.broadcast %c16_i32_11 : i32 to vector<16x1xi32>
    %24 = arith.cmpi slt, %2, %23 : vector<16x1xi32>
    %25 = arith.andi %22, %24 : vector<16x1xi1>
    %cst_12 = arith.constant 0.000000e+00 : f32
    %26 = vector.shape_cast %25 : vector<16x1xi1> to vector<16x1xi1>
    %27 = vector.broadcast %26 : vector<16x1xi1> to vector<16x16xi1>
    %28 = vector.broadcast %cst_12 : f32 to vector<16x16xf32>
    %29 = arith.select %27, %20, %28 : vector<16x16xi1>, vector<16x16xf32>
    %c15_i32 = arith.constant 15 : i32
    %30 = tpu.dynamic_rotate %7 by %c15_i32 dim 0 : vector<16x16xf32>, i32 -> vector<16x16xf32>
    %c0_i32 = arith.constant 0 : i32
    %31 = vector.broadcast %c0_i32 : i32 to vector<16x1xi32>
    %32 = arith.cmpi sge, %2, %31 : vector<16x1xi32>
    %c15_i32_13 = arith.constant 15 : i32
    %33 = vector.broadcast %c15_i32_13 : i32 to vector<16x1xi32>
    %34 = arith.cmpi slt, %2, %33 : vector<16x1xi32>
    %35 = arith.andi %32, %34 : vector<16x1xi1>
    %cst_14 = arith.constant 0.000000e+00 : f32
    %36 = vector.shape_cast %35 : vector<16x1xi1> to vector<16x1xi1>
    %37 = vector.broadcast %36 : vector<16x1xi1> to vector<16x16xi1>
    %38 = vector.broadcast %cst_14 : f32 to vector<16x16xf32>
    %39 = arith.select %37, %30, %38 : vector<16x16xi1>, vector<16x16xf32>
    %c14_i32 = arith.constant 14 : i32
    %40 = tpu.dynamic_rotate %7 by %c14_i32 dim 0 : vector<16x16xf32>, i32 -> vector<16x16xf32>
    %c0_i32_15 = arith.constant 0 : i32
    %41 = vector.broadcast %c0_i32_15 : i32 to vector<16x1xi32>
    %42 = arith.cmpi sge, %2, %41 : vector<16x1xi32>
    %c14_i32_16 = arith.constant 14 : i32
    %43 = vector.broadcast %c14_i32_16 : i32 to vector<16x1xi32>
    %44 = arith.cmpi slt, %2, %43 : vector<16x1xi32>
    %45 = arith.andi %42, %44 : vector<16x1xi1>
    %cst_17 = arith.constant 0.000000e+00 : f32
    %46 = vector.shape_cast %45 : vector<16x1xi1> to vector<16x1xi1>
    %47 = vector.broadcast %46 : vector<16x1xi1> to vector<16x16xi1>
    %48 = vector.broadcast %cst_17 : f32 to vector<16x16xf32>
    %49 = arith.select %47, %40, %48 : vector<16x16xi1>, vector<16x16xf32>
    %50 = tpu.concatenate %19, %29, %7, %39, %49 in 1 : vector<16x16xf32>, vector<16x16xf32>, vector<16x16xf32>, vector<16x16xf32>, vector<16x16xf32> -> vector<16x80xf32>
    %51 = arith.truncf %50 : vector<16x80xf32> to vector<16x80xbf16>
    %cst_18 = arith.constant dense<0.000000e+00> : vector<16x32xf32>
    %52 = tpu.matmul %51, %8, %cst_18 {dimension_numbers = #tpu.dot_dimension_numbers<[1], [0], [0], [1], [0, 0, 1, 1], [], []>} : vector<16x80xbf16>, vector<80x32xbf16>, vector<16x32xf32> -> vector<16x32xf32>
    %53 = vector.broadcast %9 : vector<1x32xf32> to vector<16x32xf32>
    %54 = arith.addf %52, %53 : vector<16x32xf32>
    %cst_19 = arith.constant 0.000000e+00 : f32
    %55 = vector.broadcast %cst_19 : f32 to vector<16x32xf32>
    %56 = arith.maximumf %54, %55 : vector<16x32xf32>
    %57 = vector.broadcast %1 : vector<16x1xf32> to vector<16x32xf32>
    %58 = arith.mulf %56, %57 : vector<16x32xf32>
    %c0_20 = arith.constant 0 : index
    %c0_21 = arith.constant 0 : index
    %59 = vector.load %arg5[%c0_20, %c0_21] : memref<160x32xbf16, #tpu.memory_space<vmem>>, vector<160x32xbf16>
    %c0_22 = arith.constant 0 : index
    %c0_23 = arith.constant 0 : index
    %60 = vector.load %arg6[%c0_22, %c0_23] : memref<1x32xf32, #tpu.memory_space<vmem>>, vector<1x32xf32>
    %c2_i32_24 = arith.constant 2 : i32
    %61 = tpu.dynamic_rotate %58 by %c2_i32_24 dim 0 : vector<16x32xf32>, i32 -> vector<16x32xf32>
    %c2_i32_25 = arith.constant 2 : i32
    %62 = vector.broadcast %c2_i32_25 : i32 to vector<16x1xi32>
    %63 = arith.cmpi sge, %2, %62 : vector<16x1xi32>
    %c16_i32_26 = arith.constant 16 : i32
    %64 = vector.broadcast %c16_i32_26 : i32 to vector<16x1xi32>
    %65 = arith.cmpi slt, %2, %64 : vector<16x1xi32>
    %66 = arith.andi %63, %65 : vector<16x1xi1>
    %cst_27 = arith.constant 0.000000e+00 : f32
    %67 = vector.shape_cast %66 : vector<16x1xi1> to vector<16x1xi1>
    %68 = vector.broadcast %67 : vector<16x1xi1> to vector<16x32xi1>
    %69 = vector.broadcast %cst_27 : f32 to vector<16x32xf32>
    %70 = arith.select %68, %61, %69 : vector<16x32xi1>, vector<16x32xf32>
    %c1_i32_28 = arith.constant 1 : i32
    %71 = tpu.dynamic_rotate %58 by %c1_i32_28 dim 0 : vector<16x32xf32>, i32 -> vector<16x32xf32>
    %c1_i32_29 = arith.constant 1 : i32
    %72 = vector.broadcast %c1_i32_29 : i32 to vector<16x1xi32>
    %73 = arith.cmpi sge, %2, %72 : vector<16x1xi32>
    %c16_i32_30 = arith.constant 16 : i32
    %74 = vector.broadcast %c16_i32_30 : i32 to vector<16x1xi32>
    %75 = arith.cmpi slt, %2, %74 : vector<16x1xi32>
    %76 = arith.andi %73, %75 : vector<16x1xi1>
    %cst_31 = arith.constant 0.000000e+00 : f32
    %77 = vector.shape_cast %76 : vector<16x1xi1> to vector<16x1xi1>
    %78 = vector.broadcast %77 : vector<16x1xi1> to vector<16x32xi1>
    %79 = vector.broadcast %cst_31 : f32 to vector<16x32xf32>
    %80 = arith.select %78, %71, %79 : vector<16x32xi1>, vector<16x32xf32>
    %c15_i32_32 = arith.constant 15 : i32
    %81 = tpu.dynamic_rotate %58 by %c15_i32_32 dim 0 : vector<16x32xf32>, i32 -> vector<16x32xf32>
    %c0_i32_33 = arith.constant 0 : i32
    %82 = vector.broadcast %c0_i32_33 : i32 to vector<16x1xi32>
    %83 = arith.cmpi sge, %2, %82 : vector<16x1xi32>
    %c15_i32_34 = arith.constant 15 : i32
    %84 = vector.broadcast %c15_i32_34 : i32 to vector<16x1xi32>
    %85 = arith.cmpi slt, %2, %84 : vector<16x1xi32>
    %86 = arith.andi %83, %85 : vector<16x1xi1>
    %cst_35 = arith.constant 0.000000e+00 : f32
    %87 = vector.shape_cast %86 : vector<16x1xi1> to vector<16x1xi1>
    %88 = vector.broadcast %87 : vector<16x1xi1> to vector<16x32xi1>
    %89 = vector.broadcast %cst_35 : f32 to vector<16x32xf32>
    %90 = arith.select %88, %81, %89 : vector<16x32xi1>, vector<16x32xf32>
    %c14_i32_36 = arith.constant 14 : i32
    %91 = tpu.dynamic_rotate %58 by %c14_i32_36 dim 0 : vector<16x32xf32>, i32 -> vector<16x32xf32>
    %c0_i32_37 = arith.constant 0 : i32
    %92 = vector.broadcast %c0_i32_37 : i32 to vector<16x1xi32>
    %93 = arith.cmpi sge, %2, %92 : vector<16x1xi32>
    %c14_i32_38 = arith.constant 14 : i32
    %94 = vector.broadcast %c14_i32_38 : i32 to vector<16x1xi32>
    %95 = arith.cmpi slt, %2, %94 : vector<16x1xi32>
    %96 = arith.andi %93, %95 : vector<16x1xi1>
    %cst_39 = arith.constant 0.000000e+00 : f32
    %97 = vector.shape_cast %96 : vector<16x1xi1> to vector<16x1xi1>
    %98 = vector.broadcast %97 : vector<16x1xi1> to vector<16x32xi1>
    %99 = vector.broadcast %cst_39 : f32 to vector<16x32xf32>
    %100 = arith.select %98, %91, %99 : vector<16x32xi1>, vector<16x32xf32>
    %101 = tpu.concatenate %70, %80, %58, %90, %100 in 1 : vector<16x32xf32>, vector<16x32xf32>, vector<16x32xf32>, vector<16x32xf32>, vector<16x32xf32> -> vector<16x160xf32>
    %102 = arith.truncf %101 : vector<16x160xf32> to vector<16x160xbf16>
    %cst_40 = arith.constant dense<0.000000e+00> : vector<16x32xf32>
    %103 = tpu.matmul %102, %59, %cst_40 {dimension_numbers = #tpu.dot_dimension_numbers<[1], [0], [0], [1], [0, 0, 1, 1], [], []>} : vector<16x160xbf16>, vector<160x32xbf16>, vector<16x32xf32> -> vector<16x32xf32>
    %104 = vector.broadcast %60 : vector<1x32xf32> to vector<16x32xf32>
    %105 = arith.addf %103, %104 : vector<16x32xf32>
    %cst_41 = arith.constant 0.000000e+00 : f32
    %106 = vector.broadcast %cst_41 : f32 to vector<16x32xf32>
    %107 = arith.maximumf %105, %106 : vector<16x32xf32>
    %108 = vector.broadcast %1 : vector<16x1xf32> to vector<16x32xf32>
    %109 = arith.mulf %107, %108 : vector<16x32xf32>
    %110 = arith.truncf %109 : vector<16x32xf32> to vector<16x32xbf16>
    %c0_42 = arith.constant 0 : index
    %c0_43 = arith.constant 0 : index
    %111 = vector.load %arg7[%c0_42, %c0_43] : memref<32x32xbf16, #tpu.memory_space<vmem>>, vector<32x32xbf16>
    %cst_44 = arith.constant dense<0.000000e+00> : vector<16x32xf32>
    %112 = tpu.matmul %110, %111, %cst_44 {dimension_numbers = #tpu.dot_dimension_numbers<[1], [0], [0], [1], [0, 0, 1, 1], [], []>} : vector<16x32xbf16>, vector<32x32xbf16>, vector<16x32xf32> -> vector<16x32xf32>
    %c0_45 = arith.constant 0 : index
    %c0_46 = arith.constant 0 : index
    %113 = vector.load %arg8[%c0_45, %c0_46] : memref<1x32xf32, #tpu.memory_space<vmem>>, vector<1x32xf32>
    %114 = vector.broadcast %113 : vector<1x32xf32> to vector<16x32xf32>
    %115 = arith.addf %112, %114 : vector<16x32xf32>
    %116 = vector.broadcast %1 : vector<16x1xf32> to vector<16x32xf32>
    %117 = arith.mulf %115, %116 : vector<16x32xf32>
    %118 = arith.truncf %117 : vector<16x32xf32> to vector<16x32xbf16>
    %c0_47 = arith.constant 0 : index
    %c0_48 = arith.constant 0 : index
    %c0_49 = arith.constant 0 : index
    %119 = vector.load %arg13[%c0_47, %c0_48, %c0_49] : memref<1x16x32xbf16, #tpu.memory_space<vmem>>, vector<1x16x32xbf16>
    %120 = vector.shape_cast %119 : vector<1x16x32xbf16> to vector<16x32xbf16>
    %121 = vector.shape_cast %118 : vector<16x32xbf16> to vector<1x16x32xbf16>
    tpu.vector_store %arg13[%c0_47, %c0_48, %c0_49], %121 {strides = array<i32>} : memref<1x16x32xbf16, #tpu.memory_space<vmem>>, vector<1x16x32xbf16>,
    %122 = vector.broadcast %1 : vector<16x1xf32> to vector<16x32xf32>
    %123 = arith.mulf %109, %122 : vector<16x32xf32>
    %cst_50 = arith.constant dense<0.000000e+00> : vector<32xf32>
    %124 = vector.multi_reduction <add>, %123, %cst_50 [0] : vector<16x32xf32> to vector<32xf32>
    %125 = vector.shape_cast %124 : vector<32xf32> to vector<1x32xf32>
    %cst_51 = arith.constant dense<0.000000e+00> : vector<1xf32>
    %126 = vector.multi_reduction <add>, %1, %cst_51 [0] : vector<16x1xf32> to vector<1xf32>
    %127 = vector.shape_cast %126 : vector<1xf32> to vector<1x1xf32>
    %cst_52 = arith.constant 1.000000e+00 : f32
    %128 = vector.broadcast %cst_52 : f32 to vector<1x1xf32>
    %129 = arith.maximumf %127, %128 : vector<1x1xf32>
    %130 = vector.broadcast %129 : vector<1x1xf32> to vector<1x32xf32>
    %131 = arith.divf %125, %130 : vector<1x32xf32>
    %132 = arith.truncf %131 : vector<1x32xf32> to vector<1x32xbf16>
    %c0_53 = arith.constant 0 : index
    %c0_54 = arith.constant 0 : index
    %133 = vector.load %arg9[%c0_53, %c0_54] : memref<32x32xbf16, #tpu.memory_space<vmem>>, vector<32x32xbf16>
    %cst_55 = arith.constant dense<0.000000e+00> : vector<1x32xf32>
    %134 = tpu.matmul %132, %133, %cst_55 {dimension_numbers = #tpu.dot_dimension_numbers<[1], [0], [0], [1], [0, 0, 1, 1], [], []>} : vector<1x32xbf16>, vector<32x32xbf16>, vector<1x32xf32> -> vector<1x32xf32>
    %c0_56 = arith.constant 0 : index
    %c0_57 = arith.constant 0 : index
    %135 = vector.load %arg10[%c0_56, %c0_57] : memref<1x32xf32, #tpu.memory_space<vmem>>, vector<1x32xf32>
    %136 = arith.addf %134, %135 : vector<1x32xf32>
    %137 = math.tanh %136 : vector<1x32xf32>
    %138 = arith.truncf %137 : vector<1x32xf32> to vector<1x32xbf16>
    %c0_58 = arith.constant 0 : index
    %c0_59 = arith.constant 0 : index
    %139 = vector.load %arg11[%c0_58, %c0_59] : memref<32x64xbf16, #tpu.memory_space<vmem>>, vector<32x64xbf16>
    %cst_60 = arith.constant dense<0.000000e+00> : vector<1x64xf32>
    %140 = tpu.matmul %138, %139, %cst_60 {dimension_numbers = #tpu.dot_dimension_numbers<[1], [0], [0], [1], [0, 0, 1, 1], [], []>} : vector<1x32xbf16>, vector<32x64xbf16>, vector<1x64xf32> -> vector<1x64xf32>
    %c0_61 = arith.constant 0 : index
    %c0_62 = arith.constant 0 : index
    %141 = vector.load %arg12[%c0_61, %c0_62] : memref<1x64xf32, #tpu.memory_space<vmem>>, vector<1x64xf32>
    %142 = arith.addf %140, %141 : vector<1x64xf32>
    %143 = arith.truncf %142 : vector<1x64xf32> to vector<1x64xbf16>
    %c0_63 = arith.constant 0 : index
    %c0_64 = arith.constant 0 : index
    %c0_65 = arith.constant 0 : index
    %144 = vector.load %arg14[%c0_63, %c0_64, %c0_65] : memref<1x1x64xbf16, #tpu.memory_space<vmem>>, vector<1x1x64xbf16>
    %145 = vector.shape_cast %144 : vector<1x1x64xbf16> to vector<1x64xbf16>
    %146 = vector.shape_cast %143 : vector<1x64xbf16> to vector<1x1x64xbf16>
    tpu.vector_store %arg14[%c0_63, %c0_64, %c0_65], %146 {strides = array<i32>} : memref<1x1x64xbf16, #tpu.memory_space<vmem>>, vector<1x1x64xbf16>,
    return
  }
  func.func @transform_0(%arg0: i32) -> (i32, i32, i32) {
    %c0_i32 = arith.constant 0 : i32
    %c0_i32_0 = arith.constant 0 : i32
    %c0_i32_1 = arith.constant 0 : i32
    return %arg0, %c0_i32, %c0_i32_0 : i32, i32, i32
  }
  func.func @transform_1(%arg0: i32) -> (i32, i32, i32) {
    %c0_i32 = arith.constant 0 : i32
    %c0_i32_0 = arith.constant 0 : i32
    %c0_i32_1 = arith.constant 0 : i32
    return %arg0, %c0_i32, %c0_i32_0 : i32, i32, i32
  }
  func.func @transform_2(%arg0: i32) -> (i32, i32) {
    %c0_i32 = arith.constant 0 : i32
    %c0_i32_0 = arith.constant 0 : i32
    %c0_i32_1 = arith.constant 0 : i32
    return %c0_i32, %c0_i32_0 : i32, i32
  }
  func.func @transform_3(%arg0: i32) -> (i32, i32) {
    %c0_i32 = arith.constant 0 : i32
    %c0_i32_0 = arith.constant 0 : i32
    %c0_i32_1 = arith.constant 0 : i32
    return %c0_i32, %c0_i32_0 : i32, i32
  }
  func.func @transform_4(%arg0: i32) -> (i32, i32) {
    %c0_i32 = arith.constant 0 : i32
    %c0_i32_0 = arith.constant 0 : i32
    %c0_i32_1 = arith.constant 0 : i32
    return %c0_i32, %c0_i32_0 : i32, i32
  }
  func.func @transform_5(%arg0: i32) -> (i32, i32) {
    %c0_i32 = arith.constant 0 : i32
    %c0_i32_0 = arith.constant 0 : i32
    %c0_i32_1 = arith.constant 0 : i32
    return %c0_i32, %c0_i32_0 : i32, i32
  }
  func.func @transform_6(%arg0: i32) -> (i32, i32) {
    %c0_i32 = arith.constant 0 : i32
    %c0_i32_0 = arith.constant 0 : i32
    %c0_i32_1 = arith.constant 0 : i32
    return %c0_i32, %c0_i32_0 : i32, i32
  }
  func.func @transform_7(%arg0: i32) -> (i32, i32) {
    %c0_i32 = arith.constant 0 : i32
    %c0_i32_0 = arith.constant 0 : i32
    %c0_i32_1 = arith.constant 0 : i32
    return %c0_i32, %c0_i32_0 : i32, i32
  }
  func.func @transform_8(%arg0: i32) -> (i32, i32) {
    %c0_i32 = arith.constant 0 : i32
    %c0_i32_0 = arith.constant 0 : i32
    %c0_i32_1 = arith.constant 0 : i32
    return %c0_i32, %c0_i32_0 : i32, i32
  }
  func.func @transform_9(%arg0: i32) -> (i32, i32) {
    %c0_i32 = arith.constant 0 : i32
    %c0_i32_0 = arith.constant 0 : i32
    %c0_i32_1 = arith.constant 0 : i32
    return %c0_i32, %c0_i32_0 : i32, i32
  }
  func.func @transform_10(%arg0: i32) -> (i32, i32) {
    %c0_i32 = arith.constant 0 : i32
    %c0_i32_0 = arith.constant 0 : i32
    %c0_i32_1 = arith.constant 0 : i32
    return %c0_i32, %c0_i32_0 : i32, i32
  }
  func.func @transform_11(%arg0: i32) -> (i32, i32) {
    %c0_i32 = arith.constant 0 : i32
    %c0_i32_0 = arith.constant 0 : i32
    %c0_i32_1 = arith.constant 0 : i32
    return %c0_i32, %c0_i32_0 : i32, i32
  }
  func.func @transform_12(%arg0: i32) -> (i32, i32, i32) {
    %c0_i32 = arith.constant 0 : i32
    %c0_i32_0 = arith.constant 0 : i32
    %c0_i32_1 = arith.constant 0 : i32
    return %arg0, %c0_i32, %c0_i32_0 : i32, i32, i32
  }
  func.func @transform_13(%arg0: i32) -> (i32, i32, i32) {
    %c0_i32 = arith.constant 0 : i32
    %c0_i32_0 = arith.constant 0 : i32
    %c0_i32_1 = arith.constant 0 : i32
    return %arg0, %c0_i32, %c0_i32_0 : i32, i32, i32
  }
}

module attributes {stable_mosaic.version = 11 : i64} {
  func.func @_content_encoder_kernel(%arg0: i32, %arg1: memref<1x16x27xbf16, #tpu.memory_space<vmem>>, %arg2: memref<1x16x32xbf16, #tpu.memory_space<vmem>>, %arg3: memref<1x1x32xbf16, #tpu.memory_space<vmem>>, %arg4: memref<1x16x1xf32, #tpu.memory_space<vmem>>, %arg5: memref<27x32xbf16, #tpu.memory_space<vmem>>, %arg6: memref<1x32xf32, #tpu.memory_space<vmem>>, %arg7: memref<2x96x32xbf16, #tpu.memory_space<vmem>>, %arg8: memref<2x1x32xf32, #tpu.memory_space<vmem>>, %arg9: memref<32x18xbf16, #tpu.memory_space<vmem>>, %arg10: memref<1x18xf32, #tpu.memory_space<vmem>>, %arg11: memref<1x16x18xbf16, #tpu.memory_space<vmem>>, %arg12: memref<1x1x32xf32, #tpu.memory_space<vmem>>) attributes {dimension_semantics = [#tpu.dimension_semantics<parallel>], iteration_bounds = array<i64: 2>, scalar_prefetch = 0 : i64, scratch_operands = 0 : i64, tpu.core_type = #tpu.core_type<tc>, window_params = [{transform_indices = @transform_0, window_bounds = array<i64: 1, 16, 27>}, {transform_indices = @transform_1, window_bounds = array<i64: 1, 16, 32>}, {transform_indices = @transform_2, window_bounds = array<i64: 1, 1, 32>}, {transform_indices = @transform_3, window_bounds = array<i64: 1, 16, 1>}, {pipeline_mode = #tpu.pipeline_mode<synchronous>, transform_indices = @transform_4, window_bounds = array<i64: 27, 32>}, {pipeline_mode = #tpu.pipeline_mode<synchronous>, transform_indices = @transform_5, window_bounds = array<i64: 1, 32>}, {pipeline_mode = #tpu.pipeline_mode<synchronous>, transform_indices = @transform_6, window_bounds = array<i64: 2, 96, 32>}, {pipeline_mode = #tpu.pipeline_mode<synchronous>, transform_indices = @transform_7, window_bounds = array<i64: 2, 1, 32>}, {pipeline_mode = #tpu.pipeline_mode<synchronous>, transform_indices = @transform_8, window_bounds = array<i64: 32, 18>}, {pipeline_mode = #tpu.pipeline_mode<synchronous>, transform_indices = @transform_9, window_bounds = array<i64: 1, 18>}, {transform_indices = @transform_10, window_bounds = array<i64: 1, 16, 18>}, {transform_indices = @transform_11, window_bounds = array<i64: 1, 1, 32>}]} {
    %c0 = arith.constant 0 : index
    %c0_0 = arith.constant 0 : index
    %c0_1 = arith.constant 0 : index
    %0 = vector.load %arg4[%c0, %c0_0, %c0_1] : memref<1x16x1xf32, #tpu.memory_space<vmem>>, vector<1x16x1xf32>
    %1 = vector.shape_cast %0 : vector<1x16x1xf32> to vector<16x1xf32>
    %2 = tpu.iota {dimensions = array<i32: 0>} : vector<16x1xi32>
    %c0_2 = arith.constant 0 : index
    %c0_3 = arith.constant 0 : index
    %c0_4 = arith.constant 0 : index
    %3 = vector.load %arg1[%c0_2, %c0_3, %c0_4] : memref<1x16x27xbf16, #tpu.memory_space<vmem>>, vector<1x16x27xbf16>
    %4 = vector.shape_cast %3 : vector<1x16x27xbf16> to vector<16x27xbf16>
    %c0_5 = arith.constant 0 : index
    %c0_6 = arith.constant 0 : index
    %5 = vector.load %arg5[%c0_5, %c0_6] : memref<27x32xbf16, #tpu.memory_space<vmem>>, vector<27x32xbf16>
    %cst = arith.constant dense<0.000000e+00> : vector<16x32xf32>
    %6 = tpu.matmul %4, %5, %cst {dimension_numbers = #tpu.dot_dimension_numbers<[1], [0], [0], [1], [0, 0, 1, 1], [], []>} : vector<16x27xbf16>, vector<27x32xbf16>, vector<16x32xf32> -> vector<16x32xf32>
    %c0_7 = arith.constant 0 : index
    %c0_8 = arith.constant 0 : index
    %7 = vector.load %arg6[%c0_7, %c0_8] : memref<1x32xf32, #tpu.memory_space<vmem>>, vector<1x32xf32>
    %8 = vector.broadcast %7 : vector<1x32xf32> to vector<16x32xf32>
    %9 = arith.addf %6, %8 : vector<16x32xf32>
    %c0_9 = arith.constant 0 : index
    %c0_10 = arith.constant 0 : index
    %c0_11 = arith.constant 0 : index
    %10 = vector.load %arg2[%c0_9, %c0_10, %c0_11] : memref<1x16x32xbf16, #tpu.memory_space<vmem>>, vector<1x16x32xbf16>
    %11 = vector.shape_cast %10 : vector<1x16x32xbf16> to vector<16x32xbf16>
    %12 = arith.extf %11 : vector<16x32xbf16> to vector<16x32xf32>
    %13 = arith.addf %9, %12 : vector<16x32xf32>
    %c0_12 = arith.constant 0 : index
    %c0_13 = arith.constant 0 : index
    %c0_14 = arith.constant 0 : index
    %14 = vector.load %arg3[%c0_12, %c0_13, %c0_14] : memref<1x1x32xbf16, #tpu.memory_space<vmem>>, vector<1x1x32xbf16>
    %15 = vector.shape_cast %14 : vector<1x1x32xbf16> to vector<1x32xbf16>
    %16 = arith.extf %15 : vector<1x32xbf16> to vector<1x32xf32>
    %17 = vector.broadcast %16 : vector<1x32xf32> to vector<16x32xf32>
    %18 = arith.addf %13, %17 : vector<16x32xf32>
    %19 = vector.broadcast %1 : vector<16x1xf32> to vector<16x32xf32>
    %20 = arith.mulf %18, %19 : vector<16x32xf32>
    %c0_15 = arith.constant 0 : index
    %c0_16 = arith.constant 0 : index
    %c0_17 = arith.constant 0 : index
    %21 = vector.load %arg7[%c0_15, %c0_16, %c0_17] : memref<2x96x32xbf16, #tpu.memory_space<vmem>>, vector<1x96x32xbf16>
    %22 = vector.shape_cast %21 : vector<1x96x32xbf16> to vector<96x32xbf16>
    %c0_18 = arith.constant 0 : index
    %c0_19 = arith.constant 0 : index
    %c0_20 = arith.constant 0 : index
    %23 = vector.load %arg8[%c0_18, %c0_19, %c0_20] : memref<2x1x32xf32, #tpu.memory_space<vmem>>, vector<1x1x32xf32>
    %24 = vector.shape_cast %23 : vector<1x1x32xf32> to vector<1x32xf32>
    %c1_i32 = arith.constant 1 : i32
    %25 = tpu.dynamic_rotate %20 by %c1_i32 dim 0 : vector<16x32xf32>, i32 -> vector<16x32xf32>
    %c1_i32_21 = arith.constant 1 : i32
    %26 = vector.broadcast %c1_i32_21 : i32 to vector<16x1xi32>
    %27 = arith.cmpi sge, %2, %26 : vector<16x1xi32>
    %c16_i32 = arith.constant 16 : i32
    %28 = vector.broadcast %c16_i32 : i32 to vector<16x1xi32>
    %29 = arith.cmpi slt, %2, %28 : vector<16x1xi32>
    %30 = arith.andi %27, %29 : vector<16x1xi1>
    %cst_22 = arith.constant 0.000000e+00 : f32
    %31 = vector.shape_cast %30 : vector<16x1xi1> to vector<16x1xi1>
    %32 = vector.broadcast %31 : vector<16x1xi1> to vector<16x32xi1>
    %33 = vector.broadcast %cst_22 : f32 to vector<16x32xf32>
    %34 = arith.select %32, %25, %33 : vector<16x32xi1>, vector<16x32xf32>
    %c15_i32 = arith.constant 15 : i32
    %35 = tpu.dynamic_rotate %20 by %c15_i32 dim 0 : vector<16x32xf32>, i32 -> vector<16x32xf32>
    %c0_i32 = arith.constant 0 : i32
    %36 = vector.broadcast %c0_i32 : i32 to vector<16x1xi32>
    %37 = arith.cmpi sge, %2, %36 : vector<16x1xi32>
    %c15_i32_23 = arith.constant 15 : i32
    %38 = vector.broadcast %c15_i32_23 : i32 to vector<16x1xi32>
    %39 = arith.cmpi slt, %2, %38 : vector<16x1xi32>
    %40 = arith.andi %37, %39 : vector<16x1xi1>
    %cst_24 = arith.constant 0.000000e+00 : f32
    %41 = vector.shape_cast %40 : vector<16x1xi1> to vector<16x1xi1>
    %42 = vector.broadcast %41 : vector<16x1xi1> to vector<16x32xi1>
    %43 = vector.broadcast %cst_24 : f32 to vector<16x32xf32>
    %44 = arith.select %42, %35, %43 : vector<16x32xi1>, vector<16x32xf32>
    %45 = tpu.concatenate %34, %20, %44 in 1 : vector<16x32xf32>, vector<16x32xf32>, vector<16x32xf32> -> vector<16x96xf32>
    %46 = arith.truncf %45 : vector<16x96xf32> to vector<16x96xbf16>
    %cst_25 = arith.constant dense<0.000000e+00> : vector<16x32xf32>
    %47 = tpu.matmul %46, %22, %cst_25 {dimension_numbers = #tpu.dot_dimension_numbers<[1], [0], [0], [1], [0, 0, 1, 1], [], []>} : vector<16x96xbf16>, vector<96x32xbf16>, vector<16x32xf32> -> vector<16x32xf32>
    %48 = vector.broadcast %24 : vector<1x32xf32> to vector<16x32xf32>
    %49 = arith.addf %47, %48 : vector<16x32xf32>
    %50 = math.tanh %49 : vector<16x32xf32>
    %51 = vector.broadcast %1 : vector<16x1xf32> to vector<16x32xf32>
    %52 = arith.mulf %50, %51 : vector<16x32xf32>
    %c1 = arith.constant 1 : index
    %c0_26 = arith.constant 0 : index
    %c0_27 = arith.constant 0 : index
    %53 = vector.load %arg7[%c1, %c0_26, %c0_27] : memref<2x96x32xbf16, #tpu.memory_space<vmem>>, vector<1x96x32xbf16>
    %54 = vector.shape_cast %53 : vector<1x96x32xbf16> to vector<96x32xbf16>
    %c1_28 = arith.constant 1 : index
    %c0_29 = arith.constant 0 : index
    %c0_30 = arith.constant 0 : index
    %55 = vector.load %arg8[%c1_28, %c0_29, %c0_30] : memref<2x1x32xf32, #tpu.memory_space<vmem>>, vector<1x1x32xf32>
    %56 = vector.shape_cast %55 : vector<1x1x32xf32> to vector<1x32xf32>
    %c1_i32_31 = arith.constant 1 : i32
    %57 = tpu.dynamic_rotate %52 by %c1_i32_31 dim 0 : vector<16x32xf32>, i32 -> vector<16x32xf32>
    %c1_i32_32 = arith.constant 1 : i32
    %58 = vector.broadcast %c1_i32_32 : i32 to vector<16x1xi32>
    %59 = arith.cmpi sge, %2, %58 : vector<16x1xi32>
    %c16_i32_33 = arith.constant 16 : i32
    %60 = vector.broadcast %c16_i32_33 : i32 to vector<16x1xi32>
    %61 = arith.cmpi slt, %2, %60 : vector<16x1xi32>
    %62 = arith.andi %59, %61 : vector<16x1xi1>
    %cst_34 = arith.constant 0.000000e+00 : f32
    %63 = vector.shape_cast %62 : vector<16x1xi1> to vector<16x1xi1>
    %64 = vector.broadcast %63 : vector<16x1xi1> to vector<16x32xi1>
    %65 = vector.broadcast %cst_34 : f32 to vector<16x32xf32>
    %66 = arith.select %64, %57, %65 : vector<16x32xi1>, vector<16x32xf32>
    %c15_i32_35 = arith.constant 15 : i32
    %67 = tpu.dynamic_rotate %52 by %c15_i32_35 dim 0 : vector<16x32xf32>, i32 -> vector<16x32xf32>
    %c0_i32_36 = arith.constant 0 : i32
    %68 = vector.broadcast %c0_i32_36 : i32 to vector<16x1xi32>
    %69 = arith.cmpi sge, %2, %68 : vector<16x1xi32>
    %c15_i32_37 = arith.constant 15 : i32
    %70 = vector.broadcast %c15_i32_37 : i32 to vector<16x1xi32>
    %71 = arith.cmpi slt, %2, %70 : vector<16x1xi32>
    %72 = arith.andi %69, %71 : vector<16x1xi1>
    %cst_38 = arith.constant 0.000000e+00 : f32
    %73 = vector.shape_cast %72 : vector<16x1xi1> to vector<16x1xi1>
    %74 = vector.broadcast %73 : vector<16x1xi1> to vector<16x32xi1>
    %75 = vector.broadcast %cst_38 : f32 to vector<16x32xf32>
    %76 = arith.select %74, %67, %75 : vector<16x32xi1>, vector<16x32xf32>
    %77 = tpu.concatenate %66, %52, %76 in 1 : vector<16x32xf32>, vector<16x32xf32>, vector<16x32xf32> -> vector<16x96xf32>
    %78 = arith.truncf %77 : vector<16x96xf32> to vector<16x96xbf16>
    %cst_39 = arith.constant dense<0.000000e+00> : vector<16x32xf32>
    %79 = tpu.matmul %78, %54, %cst_39 {dimension_numbers = #tpu.dot_dimension_numbers<[1], [0], [0], [1], [0, 0, 1, 1], [], []>} : vector<16x96xbf16>, vector<96x32xbf16>, vector<16x32xf32> -> vector<16x32xf32>
    %80 = vector.broadcast %56 : vector<1x32xf32> to vector<16x32xf32>
    %81 = arith.addf %79, %80 : vector<16x32xf32>
    %82 = math.tanh %81 : vector<16x32xf32>
    %83 = vector.broadcast %1 : vector<16x1xf32> to vector<16x32xf32>
    %84 = arith.mulf %82, %83 : vector<16x32xf32>
    %85 = vector.broadcast %1 : vector<16x1xf32> to vector<16x32xf32>
    %86 = arith.mulf %84, %85 : vector<16x32xf32>
    %cst_40 = arith.constant dense<0.000000e+00> : vector<32xf32>
    %87 = vector.multi_reduction <add>, %86, %cst_40 [0] : vector<16x32xf32> to vector<32xf32>
    %88 = vector.shape_cast %87 : vector<32xf32> to vector<1x32xf32>
    %cst_41 = arith.constant dense<0.000000e+00> : vector<1xf32>
    %89 = vector.multi_reduction <add>, %1, %cst_41 [0] : vector<16x1xf32> to vector<1xf32>
    %90 = vector.shape_cast %89 : vector<1xf32> to vector<1x1xf32>
    %cst_42 = arith.constant 1.000000e+00 : f32
    %91 = vector.broadcast %cst_42 : f32 to vector<1x1xf32>
    %92 = arith.maximumf %90, %91 : vector<1x1xf32>
    %93 = vector.broadcast %92 : vector<1x1xf32> to vector<1x32xf32>
    %94 = arith.divf %88, %93 : vector<1x32xf32>
    %c0_43 = arith.constant 0 : index
    %c0_44 = arith.constant 0 : index
    %c0_45 = arith.constant 0 : index
    %95 = vector.load %arg12[%c0_43, %c0_44, %c0_45] : memref<1x1x32xf32, #tpu.memory_space<vmem>>, vector<1x1x32xf32>
    %96 = vector.shape_cast %95 : vector<1x1x32xf32> to vector<1x32xf32>
    %97 = vector.shape_cast %94 : vector<1x32xf32> to vector<1x1x32xf32>
    tpu.vector_store %arg12[%c0_43, %c0_44, %c0_45], %97 {strides = array<i32>} : memref<1x1x32xf32, #tpu.memory_space<vmem>>, vector<1x1x32xf32>,
    %98 = arith.truncf %84 : vector<16x32xf32> to vector<16x32xbf16>
    %c0_46 = arith.constant 0 : index
    %c0_47 = arith.constant 0 : index
    %99 = vector.load %arg9[%c0_46, %c0_47] : memref<32x18xbf16, #tpu.memory_space<vmem>>, vector<32x18xbf16>
    %cst_48 = arith.constant dense<0.000000e+00> : vector<16x18xf32>
    %100 = tpu.matmul %98, %99, %cst_48 {dimension_numbers = #tpu.dot_dimension_numbers<[1], [0], [0], [1], [0, 0, 1, 1], [], []>} : vector<16x32xbf16>, vector<32x18xbf16>, vector<16x18xf32> -> vector<16x18xf32>
    %c0_49 = arith.constant 0 : index
    %c0_50 = arith.constant 0 : index
    %101 = vector.load %arg10[%c0_49, %c0_50] : memref<1x18xf32, #tpu.memory_space<vmem>>, vector<1x18xf32>
    %102 = vector.broadcast %101 : vector<1x18xf32> to vector<16x18xf32>
    %103 = arith.addf %100, %102 : vector<16x18xf32>
    %104 = vector.broadcast %1 : vector<16x1xf32> to vector<16x18xf32>
    %105 = arith.mulf %103, %104 : vector<16x18xf32>
    %106 = arith.truncf %105 : vector<16x18xf32> to vector<16x18xbf16>
    %c0_51 = arith.constant 0 : index
    %c0_52 = arith.constant 0 : index
    %c0_53 = arith.constant 0 : index
    %107 = vector.load %arg11[%c0_51, %c0_52, %c0_53] : memref<1x16x18xbf16, #tpu.memory_space<vmem>>, vector<1x16x18xbf16>
    %108 = vector.shape_cast %107 : vector<1x16x18xbf16> to vector<16x18xbf16>
    %109 = vector.shape_cast %106 : vector<16x18xbf16> to vector<1x16x18xbf16>
    tpu.vector_store %arg11[%c0_51, %c0_52, %c0_53], %109 {strides = array<i32>} : memref<1x16x18xbf16, #tpu.memory_space<vmem>>, vector<1x16x18xbf16>,
    return
  }
  func.func @transform_0(%arg0: i32) -> (i32, i32, i32) {
    %c0_i32 = arith.constant 0 : i32
    %c0_i32_0 = arith.constant 0 : i32
    %c0_i32_1 = arith.constant 0 : i32
    return %arg0, %c0_i32, %c0_i32_0 : i32, i32, i32
  }
  func.func @transform_1(%arg0: i32) -> (i32, i32, i32) {
    %c0_i32 = arith.constant 0 : i32
    %c0_i32_0 = arith.constant 0 : i32
    %c0_i32_1 = arith.constant 0 : i32
    return %arg0, %c0_i32, %c0_i32_0 : i32, i32, i32
  }
  func.func @transform_2(%arg0: i32) -> (i32, i32, i32) {
    %c0_i32 = arith.constant 0 : i32
    %c0_i32_0 = arith.constant 0 : i32
    %c0_i32_1 = arith.constant 0 : i32
    return %arg0, %c0_i32, %c0_i32_0 : i32, i32, i32
  }
  func.func @transform_3(%arg0: i32) -> (i32, i32, i32) {
    %c0_i32 = arith.constant 0 : i32
    %c0_i32_0 = arith.constant 0 : i32
    %c0_i32_1 = arith.constant 0 : i32
    return %arg0, %c0_i32, %c0_i32_0 : i32, i32, i32
  }
  func.func @transform_4(%arg0: i32) -> (i32, i32) {
    %c0_i32 = arith.constant 0 : i32
    %c0_i32_0 = arith.constant 0 : i32
    %c0_i32_1 = arith.constant 0 : i32
    return %c0_i32, %c0_i32_0 : i32, i32
  }
  func.func @transform_5(%arg0: i32) -> (i32, i32) {
    %c0_i32 = arith.constant 0 : i32
    %c0_i32_0 = arith.constant 0 : i32
    %c0_i32_1 = arith.constant 0 : i32
    return %c0_i32, %c0_i32_0 : i32, i32
  }
  func.func @transform_6(%arg0: i32) -> (i32, i32, i32) {
    %c0_i32 = arith.constant 0 : i32
    %c0_i32_0 = arith.constant 0 : i32
    %c0_i32_1 = arith.constant 0 : i32
    %c0_i32_2 = arith.constant 0 : i32
    return %c0_i32, %c0_i32_0, %c0_i32_1 : i32, i32, i32
  }
  func.func @transform_7(%arg0: i32) -> (i32, i32, i32) {
    %c0_i32 = arith.constant 0 : i32
    %c0_i32_0 = arith.constant 0 : i32
    %c0_i32_1 = arith.constant 0 : i32
    %c0_i32_2 = arith.constant 0 : i32
    return %c0_i32, %c0_i32_0, %c0_i32_1 : i32, i32, i32
  }
  func.func @transform_8(%arg0: i32) -> (i32, i32) {
    %c0_i32 = arith.constant 0 : i32
    %c0_i32_0 = arith.constant 0 : i32
    %c0_i32_1 = arith.constant 0 : i32
    return %c0_i32, %c0_i32_0 : i32, i32
  }
  func.func @transform_9(%arg0: i32) -> (i32, i32) {
    %c0_i32 = arith.constant 0 : i32
    %c0_i32_0 = arith.constant 0 : i32
    %c0_i32_1 = arith.constant 0 : i32
    return %c0_i32, %c0_i32_0 : i32, i32
  }
  func.func @transform_10(%arg0: i32) -> (i32, i32, i32) {
    %c0_i32 = arith.constant 0 : i32
    %c0_i32_0 = arith.constant 0 : i32
    %c0_i32_1 = arith.constant 0 : i32
    return %arg0, %c0_i32, %c0_i32_0 : i32, i32, i32
  }
  func.func @transform_11(%arg0: i32) -> (i32, i32, i32) {
    %c0_i32 = arith.constant 0 : i32
    %c0_i32_0 = arith.constant 0 : i32
    %c0_i32_1 = arith.constant 0 : i32
    return %arg0, %c0_i32, %c0_i32_0 : i32, i32, i32
  }
}

module attributes {stable_mosaic.version = 11 : i64} {
  func.func @_cfm_loss_kernel(%arg0: i32, %arg1: memref<1x16x16xbf16, #tpu.memory_space<vmem>>, %arg2: memref<1x16x16xbf16, #tpu.memory_space<vmem>>, %arg3: memref<1x16x16xbf16, #tpu.memory_space<vmem>>, %arg4: memref<1x1x1xf32, #tpu.memory_space<vmem>>, %arg5: memref<1x1x32xf32, #tpu.memory_space<vmem>>, %arg6: memref<1x1x32xbf16, #tpu.memory_space<vmem>>, %arg7: memref<1x16x1xf32, #tpu.memory_space<vmem>>, %arg8: memref<32x32xbf16, #tpu.memory_space<vmem>>, %arg9: memref<1x32xf32, #tpu.memory_space<vmem>>, %arg10: memref<96x32xbf16, #tpu.memory_space<vmem>>, %arg11: memref<1x32xf32, #tpu.memory_space<vmem>>, %arg12: memref<32x16xbf16, #tpu.memory_space<vmem>>, %arg13: memref<1x16xf32, #tpu.memory_space<vmem>>, %arg14: memref<1x1x2xf32, #tpu.memory_space<vmem>>) attributes {dimension_semantics = [#tpu.dimension_semantics<parallel>], iteration_bounds = array<i64: 2>, scalar_prefetch = 0 : i64, scratch_operands = 0 : i64, tpu.core_type = #tpu.core_type<tc>, window_params = [{transform_indices = @transform_0, window_bounds = array<i64: 1, 16, 16>}, {transform_indices = @transform_1, window_bounds = array<i64: 1, 16, 16>}, {transform_indices = @transform_2, window_bounds = array<i64: 1, 16, 16>}, {transform_indices = @transform_3, window_bounds = array<i64: 1, 1, 1>}, {transform_indices = @transform_4, window_bounds = array<i64: 1, 1, 32>}, {transform_indices = @transform_5, window_bounds = array<i64: 1, 1, 32>}, {transform_indices = @transform_6, window_bounds = array<i64: 1, 16, 1>}, {pipeline_mode = #tpu.pipeline_mode<synchronous>, transform_indices = @transform_7, window_bounds = array<i64: 32, 32>}, {pipeline_mode = #tpu.pipeline_mode<synchronous>, transform_indices = @transform_8, window_bounds = array<i64: 1, 32>}, {pipeline_mode = #tpu.pipeline_mode<synchronous>, transform_indices = @transform_9, window_bounds = array<i64: 96, 32>}, {pipeline_mode = #tpu.pipeline_mode<synchronous>, transform_indices = @transform_10, window_bounds = array<i64: 1, 32>}, {pipeline_mode = #tpu.pipeline_mode<synchronous>, transform_indices = @transform_11, window_bounds = array<i64: 32, 16>}, {pipeline_mode = #tpu.pipeline_mode<synchronous>, transform_indices = @transform_12, window_bounds = array<i64: 1, 16>}, {transform_indices = @transform_13, window_bounds = array<i64: 1, 1, 2>}]} {
    %c0 = arith.constant 0 : index
    %c0_0 = arith.constant 0 : index
    %c0_1 = arith.constant 0 : index
    %0 = vector.load %arg7[%c0, %c0_0, %c0_1] : memref<1x16x1xf32, #tpu.memory_space<vmem>>, vector<1x16x1xf32>
    %1 = vector.shape_cast %0 : vector<1x16x1xf32> to vector<16x1xf32>
    %2 = tpu.iota {dimensions = array<i32: 0>} : vector<16x1xi32>
    %c0_2 = arith.constant 0 : index
    %c0_3 = arith.constant 0 : index
    %c0_4 = arith.constant 0 : index
    %3 = vector.load %arg4[%c0_2, %c0_3, %c0_4] : memref<1x1x1xf32, #tpu.memory_space<vmem>>, vector<1x1x1xf32>
    %4 = vector.shape_cast %3 : vector<1x1x1xf32> to vector<1x1xf32>
    %c0_5 = arith.constant 0 : index
    %c0_6 = arith.constant 0 : index
    %c0_7 = arith.constant 0 : index
    %5 = vector.load %arg1[%c0_5, %c0_6, %c0_7] : memref<1x16x16xbf16, #tpu.memory_space<vmem>>, vector<1x16x16xbf16>
    %6 = vector.shape_cast %5 : vector<1x16x16xbf16> to vector<16x16xbf16>
    %7 = arith.extf %6 : vector<16x16xbf16> to vector<16x16xf32>
    %c0_8 = arith.constant 0 : index
    %c0_9 = arith.constant 0 : index
    %c0_10 = arith.constant 0 : index
    %8 = vector.load %arg2[%c0_8, %c0_9, %c0_10] : memref<1x16x16xbf16, #tpu.memory_space<vmem>>, vector<1x16x16xbf16>
    %9 = vector.shape_cast %8 : vector<1x16x16xbf16> to vector<16x16xbf16>
    %10 = arith.extf %9 : vector<16x16xbf16> to vector<16x16xf32>
    %c0_11 = arith.constant 0 : index
    %c0_12 = arith.constant 0 : index
    %c0_13 = arith.constant 0 : index
    %11 = vector.load %arg3[%c0_11, %c0_12, %c0_13] : memref<1x16x16xbf16, #tpu.memory_space<vmem>>, vector<1x16x16xbf16>
    %12 = vector.shape_cast %11 : vector<1x16x16xbf16> to vector<16x16xbf16>
    %13 = arith.extf %12 : vector<16x16xbf16> to vector<16x16xf32>
    %14 = vector.broadcast %1 : vector<16x1xf32> to vector<16x16xf32>
    %15 = arith.mulf %7, %14 : vector<16x16xf32>
    %cst = arith.constant 0.999899983 : f32
    %16 = vector.broadcast %cst : f32 to vector<1x1xf32>
    %17 = arith.mulf %16, %4 : vector<1x1xf32>
    %cst_14 = arith.constant 1.000000e+00 : f32
    %18 = vector.broadcast %cst_14 : f32 to vector<1x1xf32>
    %19 = arith.subf %18, %17 : vector<1x1xf32>
    %20 = vector.broadcast %19 : vector<1x1xf32> to vector<16x16xf32>
    %21 = arith.mulf %20, %10 : vector<16x16xf32>
    %22 = vector.broadcast %4 : vector<1x1xf32> to vector<16x16xf32>
    %23 = arith.mulf %22, %15 : vector<16x16xf32>
    %24 = arith.addf %21, %23 : vector<16x16xf32>
    %25 = tpu.concatenate %24, %13 in 1 : vector<16x16xf32>, vector<16x16xf32> -> vector<16x32xf32>
    %26 = arith.truncf %25 : vector<16x32xf32> to vector<16x32xbf16>
    %c0_15 = arith.constant 0 : index
    %c0_16 = arith.constant 0 : index
    %27 = vector.load %arg8[%c0_15, %c0_16] : memref<32x32xbf16, #tpu.memory_space<vmem>>, vector<32x32xbf16>
    %cst_17 = arith.constant dense<0.000000e+00> : vector<16x32xf32>
    %28 = tpu.matmul %26, %27, %cst_17 {dimension_numbers = #tpu.dot_dimension_numbers<[1], [0], [0], [1], [0, 0, 1, 1], [], []>} : vector<16x32xbf16>, vector<32x32xbf16>, vector<16x32xf32> -> vector<16x32xf32>
    %c0_18 = arith.constant 0 : index
    %c0_19 = arith.constant 0 : index
    %29 = vector.load %arg9[%c0_18, %c0_19] : memref<1x32xf32, #tpu.memory_space<vmem>>, vector<1x32xf32>
    %30 = vector.broadcast %29 : vector<1x32xf32> to vector<16x32xf32>
    %31 = arith.addf %28, %30 : vector<16x32xf32>
    %c0_20 = arith.constant 0 : index
    %c0_21 = arith.constant 0 : index
    %c0_22 = arith.constant 0 : index
    %32 = vector.load %arg5[%c0_20, %c0_21, %c0_22] : memref<1x1x32xf32, #tpu.memory_space<vmem>>, vector<1x1x32xf32>
    %33 = vector.shape_cast %32 : vector<1x1x32xf32> to vector<1x32xf32>
    %34 = vector.broadcast %33 : vector<1x32xf32> to vector<16x32xf32>
    %35 = arith.addf %31, %34 : vector<16x32xf32>
    %c0_23 = arith.constant 0 : index
    %c0_24 = arith.constant 0 : index
    %c0_25 = arith.constant 0 : index
    %36 = vector.load %arg6[%c0_23, %c0_24, %c0_25] : memref<1x1x32xbf16, #tpu.memory_space<vmem>>, vector<1x1x32xbf16>
    %37 = vector.shape_cast %36 : vector<1x1x32xbf16> to vector<1x32xbf16>
    %38 = arith.extf %37 : vector<1x32xbf16> to vector<1x32xf32>
    %39 = vector.broadcast %38 : vector<1x32xf32> to vector<16x32xf32>
    %40 = arith.addf %35, %39 : vector<16x32xf32>
    %41 = math.tanh %40 : vector<16x32xf32>
    %42 = vector.broadcast %1 : vector<16x1xf32> to vector<16x32xf32>
    %43 = arith.mulf %41, %42 : vector<16x32xf32>
    %c0_26 = arith.constant 0 : index
    %c0_27 = arith.constant 0 : index
    %44 = vector.load %arg10[%c0_26, %c0_27] : memref<96x32xbf16, #tpu.memory_space<vmem>>, vector<96x32xbf16>
    %c0_28 = arith.constant 0 : index
    %c0_29 = arith.constant 0 : index
    %45 = vector.load %arg11[%c0_28, %c0_29] : memref<1x32xf32, #tpu.memory_space<vmem>>, vector<1x32xf32>
    %c1_i32 = arith.constant 1 : i32
    %46 = tpu.dynamic_rotate %43 by %c1_i32 dim 0 : vector<16x32xf32>, i32 -> vector<16x32xf32>
    %c1_i32_30 = arith.constant 1 : i32
    %47 = vector.broadcast %c1_i32_30 : i32 to vector<16x1xi32>
    %48 = arith.cmpi sge, %2, %47 : vector<16x1xi32>
    %c16_i32 = arith.constant 16 : i32
    %49 = vector.broadcast %c16_i32 : i32 to vector<16x1xi32>
    %50 = arith.cmpi slt, %2, %49 : vector<16x1xi32>
    %51 = arith.andi %48, %50 : vector<16x1xi1>
    %cst_31 = arith.constant 0.000000e+00 : f32
    %52 = vector.shape_cast %51 : vector<16x1xi1> to vector<16x1xi1>
    %53 = vector.broadcast %52 : vector<16x1xi1> to vector<16x32xi1>
    %54 = vector.broadcast %cst_31 : f32 to vector<16x32xf32>
    %55 = arith.select %53, %46, %54 : vector<16x32xi1>, vector<16x32xf32>
    %c15_i32 = arith.constant 15 : i32
    %56 = tpu.dynamic_rotate %43 by %c15_i32 dim 0 : vector<16x32xf32>, i32 -> vector<16x32xf32>
    %c0_i32 = arith.constant 0 : i32
    %57 = vector.broadcast %c0_i32 : i32 to vector<16x1xi32>
    %58 = arith.cmpi sge, %2, %57 : vector<16x1xi32>
    %c15_i32_32 = arith.constant 15 : i32
    %59 = vector.broadcast %c15_i32_32 : i32 to vector<16x1xi32>
    %60 = arith.cmpi slt, %2, %59 : vector<16x1xi32>
    %61 = arith.andi %58, %60 : vector<16x1xi1>
    %cst_33 = arith.constant 0.000000e+00 : f32
    %62 = vector.shape_cast %61 : vector<16x1xi1> to vector<16x1xi1>
    %63 = vector.broadcast %62 : vector<16x1xi1> to vector<16x32xi1>
    %64 = vector.broadcast %cst_33 : f32 to vector<16x32xf32>
    %65 = arith.select %63, %56, %64 : vector<16x32xi1>, vector<16x32xf32>
    %66 = tpu.concatenate %55, %43, %65 in 1 : vector<16x32xf32>, vector<16x32xf32>, vector<16x32xf32> -> vector<16x96xf32>
    %67 = arith.truncf %66 : vector<16x96xf32> to vector<16x96xbf16>
    %cst_34 = arith.constant dense<0.000000e+00> : vector<16x32xf32>
    %68 = tpu.matmul %67, %44, %cst_34 {dimension_numbers = #tpu.dot_dimension_numbers<[1], [0], [0], [1], [0, 0, 1, 1], [], []>} : vector<16x96xbf16>, vector<96x32xbf16>, vector<16x32xf32> -> vector<16x32xf32>
    %69 = vector.broadcast %45 : vector<1x32xf32> to vector<16x32xf32>
    %70 = arith.addf %68, %69 : vector<16x32xf32>
    %cst_35 = arith.constant 0.000000e+00 : f32
    %71 = vector.broadcast %cst_35 : f32 to vector<16x32xf32>
    %72 = arith.maximumf %70, %71 : vector<16x32xf32>
    %73 = vector.broadcast %1 : vector<16x1xf32> to vector<16x32xf32>
    %74 = arith.mulf %72, %73 : vector<16x32xf32>
    %75 = arith.truncf %74 : vector<16x32xf32> to vector<16x32xbf16>
    %c0_36 = arith.constant 0 : index
    %c0_37 = arith.constant 0 : index
    %76 = vector.load %arg12[%c0_36, %c0_37] : memref<32x16xbf16, #tpu.memory_space<vmem>>, vector<32x16xbf16>
    %cst_38 = arith.constant dense<0.000000e+00> : vector<16x16xf32>
    %77 = tpu.matmul %75, %76, %cst_38 {dimension_numbers = #tpu.dot_dimension_numbers<[1], [0], [0], [1], [0, 0, 1, 1], [], []>} : vector<16x32xbf16>, vector<32x16xbf16>, vector<16x16xf32> -> vector<16x16xf32>
    %c0_39 = arith.constant 0 : index
    %c0_40 = arith.constant 0 : index
    %78 = vector.load %arg13[%c0_39, %c0_40] : memref<1x16xf32, #tpu.memory_space<vmem>>, vector<1x16xf32>
    %79 = vector.broadcast %78 : vector<1x16xf32> to vector<16x16xf32>
    %80 = arith.addf %77, %79 : vector<16x16xf32>
    %81 = vector.broadcast %1 : vector<16x1xf32> to vector<16x16xf32>
    %82 = arith.mulf %80, %81 : vector<16x16xf32>
    %cst_41 = arith.constant 0.999899983 : f32
    %83 = vector.broadcast %cst_41 : f32 to vector<16x16xf32>
    %84 = arith.mulf %83, %10 : vector<16x16xf32>
    %85 = arith.subf %7, %84 : vector<16x16xf32>
    %86 = arith.subf %82, %85 : vector<16x16xf32>
    %87 = arith.mulf %86, %86 : vector<16x16xf32>
    %88 = vector.broadcast %1 : vector<16x1xf32> to vector<16x16xf32>
    %89 = arith.mulf %87, %88 : vector<16x16xf32>
    %90 = vector.shape_cast %89 : vector<16x16xf32> to vector<1x16x16xf32>
    %cst_42 = arith.constant dense<0.000000e+00> : vector<1xf32>
    %91 = vector.multi_reduction <add>, %90, %cst_42 [1, 2] : vector<1x16x16xf32> to vector<1xf32>
    %92 = vector.shape_cast %91 : vector<1xf32> to vector<1x1x1xf32>
    %93 = vector.extract %92[0, 0, 0] : f32 from vector<1x1x1xf32>
    %94 = vector.broadcast %93 : f32 to vector<1x1xf32>
    %95 = arith.subf %7, %13 : vector<16x16xf32>
    %96 = arith.mulf %95, %95 : vector<16x16xf32>
    %cst_43 = arith.constant 1.83787704 : f32
    %97 = vector.broadcast %cst_43 : f32 to vector<16x16xf32>
    %98 = arith.addf %96, %97 : vector<16x16xf32>
    %cst_44 = arith.constant 5.000000e-01 : f32
    %99 = vector.broadcast %cst_44 : f32 to vector<16x16xf32>
    %100 = arith.mulf %99, %98 : vector<16x16xf32>
    %101 = vector.broadcast %1 : vector<16x1xf32> to vector<16x16xf32>
    %102 = arith.mulf %100, %101 : vector<16x16xf32>
    %103 = vector.shape_cast %102 : vector<16x16xf32> to vector<1x16x16xf32>
    %cst_45 = arith.constant dense<0.000000e+00> : vector<1xf32>
    %104 = vector.multi_reduction <add>, %103, %cst_45 [1, 2] : vector<1x16x16xf32> to vector<1xf32>
    %105 = vector.shape_cast %104 : vector<1xf32> to vector<1x1x1xf32>
    %106 = vector.extract %105[0, 0, 0] : f32 from vector<1x1x1xf32>
    %107 = vector.broadcast %106 : f32 to vector<1x1xf32>
    %108 = tpu.concatenate %94, %107 in 1 : vector<1x1xf32>, vector<1x1xf32> -> vector<1x2xf32>
    %c0_46 = arith.constant 0 : index
    %c0_47 = arith.constant 0 : index
    %c0_48 = arith.constant 0 : index
    %109 = vector.load %arg14[%c0_46, %c0_47, %c0_48] : memref<1x1x2xf32, #tpu.memory_space<vmem>>, vector<1x1x2xf32>
    %110 = vector.shape_cast %109 : vector<1x1x2xf32> to vector<1x2xf32>
    %111 = vector.shape_cast %108 : vector<1x2xf32> to vector<1x1x2xf32>
    tpu.vector_store %arg14[%c0_46, %c0_47, %c0_48], %111 {strides = array<i32>} : memref<1x1x2xf32, #tpu.memory_space<vmem>>, vector<1x1x2xf32>,
    return
  }
  func.func @transform_0(%arg0: i32) -> (i32, i32, i32) {
    %c0_i32 = arith.constant 0 : i32
    %c0_i32_0 = arith.constant 0 : i32
    %c0_i32_1 = arith.constant 0 : i32
    return %arg0, %c0_i32, %c0_i32_0 : i32, i32, i32
  }
  func.func @transform_1(%arg0: i32) -> (i32, i32, i32) {
    %c0_i32 = arith.constant 0 : i32
    %c0_i32_0 = arith.constant 0 : i32
    %c0_i32_1 = arith.constant 0 : i32
    return %arg0, %c0_i32, %c0_i32_0 : i32, i32, i32
  }
  func.func @transform_2(%arg0: i32) -> (i32, i32, i32) {
    %c0_i32 = arith.constant 0 : i32
    %c0_i32_0 = arith.constant 0 : i32
    %c0_i32_1 = arith.constant 0 : i32
    return %arg0, %c0_i32, %c0_i32_0 : i32, i32, i32
  }
  func.func @transform_3(%arg0: i32) -> (i32, i32, i32) {
    %c0_i32 = arith.constant 0 : i32
    %c0_i32_0 = arith.constant 0 : i32
    %c0_i32_1 = arith.constant 0 : i32
    return %arg0, %c0_i32, %c0_i32_0 : i32, i32, i32
  }
  func.func @transform_4(%arg0: i32) -> (i32, i32, i32) {
    %c0_i32 = arith.constant 0 : i32
    %c0_i32_0 = arith.constant 0 : i32
    %c0_i32_1 = arith.constant 0 : i32
    return %arg0, %c0_i32, %c0_i32_0 : i32, i32, i32
  }
  func.func @transform_5(%arg0: i32) -> (i32, i32, i32) {
    %c0_i32 = arith.constant 0 : i32
    %c0_i32_0 = arith.constant 0 : i32
    %c0_i32_1 = arith.constant 0 : i32
    return %arg0, %c0_i32, %c0_i32_0 : i32, i32, i32
  }
  func.func @transform_6(%arg0: i32) -> (i32, i32, i32) {
    %c0_i32 = arith.constant 0 : i32
    %c0_i32_0 = arith.constant 0 : i32
    %c0_i32_1 = arith.constant 0 : i32
    return %arg0, %c0_i32, %c0_i32_0 : i32, i32, i32
  }
  func.func @transform_7(%arg0: i32) -> (i32, i32) {
    %c0_i32 = arith.constant 0 : i32
    %c0_i32_0 = arith.constant 0 : i32
    %c0_i32_1 = arith.constant 0 : i32
    return %c0_i32, %c0_i32_0 : i32, i32
  }
  func.func @transform_8(%arg0: i32) -> (i32, i32) {
    %c0_i32 = arith.constant 0 : i32
    %c0_i32_0 = arith.constant 0 : i32
    %c0_i32_1 = arith.constant 0 : i32
    return %c0_i32, %c0_i32_0 : i32, i32
  }
  func.func @transform_9(%arg0: i32) -> (i32, i32) {
    %c0_i32 = arith.constant 0 : i32
    %c0_i32_0 = arith.constant 0 : i32
    %c0_i32_1 = arith.constant 0 : i32
    return %c0_i32, %c0_i32_0 : i32, i32
  }
  func.func @transform_10(%arg0: i32) -> (i32, i32) {
    %c0_i32 = arith.constant 0 : i32
    %c0_i32_0 = arith.constant 0 : i32
    %c0_i32_1 = arith.constant 0 : i32
    return %c0_i32, %c0_i32_0 : i32, i32
  }
  func.func @transform_11(%arg0: i32) -> (i32, i32) {
    %c0_i32 = arith.constant 0 : i32
    %c0_i32_0 = arith.constant 0 : i32
    %c0_i32_1 = arith.constant 0 : i32
    return %c0_i32, %c0_i32_0 : i32, i32
  }
  func.func @transform_12(%arg0: i32) -> (i32, i32) {
    %c0_i32 = arith.constant 0 : i32
    %c0_i32_0 = arith.constant 0 : i32
    %c0_i32_1 = arith.constant 0 : i32
    return %c0_i32, %c0_i32_0 : i32, i32
  }
  func.func @transform_13(%arg0: i32) -> (i32, i32, i32) {
    %c0_i32 = arith.constant 0 : i32
    %c0_i32_0 = arith.constant 0 : i32
    %c0_i32_1 = arith.constant 0 : i32
    return %arg0, %c0_i32, %c0_i32_0 : i32, i32, i32
  }
}

module attributes {stable_mosaic.version = 11 : i64} {
  func.func @_classifier_kernel(%arg0: i32, %arg1: memref<2x32xf32, #tpu.memory_space<vmem>>, %arg2: memref<32x512xbf16, #tpu.memory_space<vmem>>, %arg3: memref<1x512xf32, #tpu.memory_space<vmem>>, %arg4: memref<512x4xbf16, #tpu.memory_space<vmem>>, %arg5: memref<1x4xf32, #tpu.memory_space<vmem>>, %arg6: memref<2x4xf32, #tpu.memory_space<vmem>>) attributes {dimension_semantics = [#tpu.dimension_semantics<arbitrary>], iteration_bounds = array<i64: 1>, scalar_prefetch = 0 : i64, scratch_operands = 0 : i64, tpu.core_type = #tpu.core_type<tc>, window_params = [{pipeline_mode = #tpu.pipeline_mode<synchronous>, transform_indices = @transform_0, window_bounds = array<i64: 2, 32>}, {pipeline_mode = #tpu.pipeline_mode<synchronous>, transform_indices = @transform_1, window_bounds = array<i64: 32, 512>}, {pipeline_mode = #tpu.pipeline_mode<synchronous>, transform_indices = @transform_2, window_bounds = array<i64: 1, 512>}, {pipeline_mode = #tpu.pipeline_mode<synchronous>, transform_indices = @transform_3, window_bounds = array<i64: 512, 4>}, {pipeline_mode = #tpu.pipeline_mode<synchronous>, transform_indices = @transform_4, window_bounds = array<i64: 1, 4>}, {pipeline_mode = #tpu.pipeline_mode<synchronous>, transform_indices = @transform_5, window_bounds = array<i64: 2, 4>}]} {
    %c0 = arith.constant 0 : index
    %c0_0 = arith.constant 0 : index
    %0 = vector.load %arg1[%c0, %c0_0] : memref<2x32xf32, #tpu.memory_space<vmem>>, vector<2x32xf32>
    %1 = arith.truncf %0 : vector<2x32xf32> to vector<2x32xbf16>
    %c0_1 = arith.constant 0 : index
    %c0_2 = arith.constant 0 : index
    %2 = vector.load %arg2[%c0_1, %c0_2] : memref<32x512xbf16, #tpu.memory_space<vmem>>, vector<32x512xbf16>
    %cst = arith.constant dense<0.000000e+00> : vector<2x512xf32>
    %3 = tpu.matmul %1, %2, %cst {dimension_numbers = #tpu.dot_dimension_numbers<[1], [0], [0], [1], [0, 0, 1, 1], [], []>} : vector<2x32xbf16>, vector<32x512xbf16>, vector<2x512xf32> -> vector<2x512xf32>
    %c0_3 = arith.constant 0 : index
    %c0_4 = arith.constant 0 : index
    %4 = vector.load %arg3[%c0_3, %c0_4] : memref<1x512xf32, #tpu.memory_space<vmem>>, vector<1x512xf32>
    %5 = vector.broadcast %4 : vector<1x512xf32> to vector<2x512xf32>
    %6 = arith.addf %3, %5 : vector<2x512xf32>
    %cst_5 = arith.constant 0.000000e+00 : f32
    %7 = vector.broadcast %cst_5 : f32 to vector<2x512xf32>
    %8 = arith.maximumf %6, %7 : vector<2x512xf32>
    %9 = arith.truncf %8 : vector<2x512xf32> to vector<2x512xbf16>
    %c0_6 = arith.constant 0 : index
    %c0_7 = arith.constant 0 : index
    %10 = vector.load %arg4[%c0_6, %c0_7] : memref<512x4xbf16, #tpu.memory_space<vmem>>, vector<512x4xbf16>
    %cst_8 = arith.constant dense<0.000000e+00> : vector<2x4xf32>
    %11 = tpu.matmul %9, %10, %cst_8 {dimension_numbers = #tpu.dot_dimension_numbers<[1], [0], [0], [1], [0, 0, 1, 1], [], []>} : vector<2x512xbf16>, vector<512x4xbf16>, vector<2x4xf32> -> vector<2x4xf32>
    %c0_9 = arith.constant 0 : index
    %c0_10 = arith.constant 0 : index
    %12 = vector.load %arg5[%c0_9, %c0_10] : memref<1x4xf32, #tpu.memory_space<vmem>>, vector<1x4xf32>
    %13 = vector.broadcast %12 : vector<1x4xf32> to vector<2x4xf32>
    %14 = arith.addf %11, %13 : vector<2x4xf32>
    %c0_11 = arith.constant 0 : index
    %c0_12 = arith.constant 0 : index
    %15 = vector.load %arg6[%c0_11, %c0_12] : memref<2x4xf32, #tpu.memory_space<vmem>>, vector<2x4xf32>
    tpu.vector_store %arg6[%c0_11, %c0_12], %14 {strides = array<i32>} : memref<2x4xf32, #tpu.memory_space<vmem>>, vector<2x4xf32>,
    return
  }
  func.func @transform_0(%arg0: i32) -> (i32, i32) {
    %c0_i32 = arith.constant 0 : i32
    %c0_i32_0 = arith.constant 0 : i32
    %c0_i32_1 = arith.constant 0 : i32
    return %c0_i32, %c0_i32_0 : i32, i32
  }
  func.func @transform_1(%arg0: i32) -> (i32, i32) {
    %c0_i32 = arith.constant 0 : i32
    %c0_i32_0 = arith.constant 0 : i32
    %c0_i32_1 = arith.constant 0 : i32
    return %c0_i32, %c0_i32_0 : i32, i32
  }
  func.func @transform_2(%arg0: i32) -> (i32, i32) {
    %c0_i32 = arith.constant 0 : i32
    %c0_i32_0 = arith.constant 0 : i32
    %c0_i32_1 = arith.constant 0 : i32
    return %c0_i32, %c0_i32_0 : i32, i32
  }
  func.func @transform_3(%arg0: i32) -> (i32, i32) {
    %c0_i32 = arith.constant 0 : i32
    %c0_i32_0 = arith.constant 0 : i32
    %c0_i32_1 = arith.constant 0 : i32
    return %c0_i32, %c0_i32_0 : i32, i32
  }
  func.func @transform_4(%arg0: i32) -> (i32, i32) {
    %c0_i32 = arith.constant 0 : i32
    %c0_i32_0 = arith.constant 0 : i32
    %c0_i32_1 = arith.constant 0 : i32
    return %c0_i32, %c0_i32_0 : i32, i32
  }
  func.func @transform_5(%arg0: i32) -> (i32, i32) {
    %c0_i32 = arith.constant 0 : i32
    %c0_i32_0 = arith.constant 0 : i32
    %c0_i32_1 = arith.constant 0 : i32
    return %c0_i32, %c0_i32_0 : i32, i32
  }
}

</mosaic_0001>

<bundles_post_ra>
// kernel: _lambda_.4
= control target key start
LH: loop header
LB: loop body
LE: loop exit
PB: predicated region body
PF: predicated region fallthrough
CT: control target
= control target key end

     0   :  { %s1491_s25 = smov 0   ;;  %s1729_s0 = inlined_call_operand.vmem [shape: bf16[2,16,16], index: 0, kind: input, shape index: {}]   ;;  %s1730_s1 = inlined_call_operand.vmem [shape: f32[2,16,1], index: 1, kind: input, shape index: {}]   ;;  %s1731_s2 = inlined_call_operand.vmem [shape: bf16[80,32], index: 2, kind: input, shape index: {}]   ;;  %s1732_s3 = inlined_call_operand.vmem [shape: f32[1,32], index: 3, kind: input, shape index: {}]   ;;  %s1733_s4 = inlined_call_operand.vmem [shape: bf16[160,32], index: 4, kind: input, shape index: {}]   ;;  %s1734_s5 = inlined_call_operand.vmem [shape: f32[1,32], index: 5, kind: input, shape index: {}]   ;;  %s1735_s6 = inlined_call_operand.vmem [shape: bf16[32,32], index: 6, kind: input, shape index: {}]   ;;  %s1736_s7 = inlined_call_operand.vmem [shape: f32[1,32], index: 7, kind: input, shape index: {}]   ;;  %s1737_s8 = inlined_call_operand.vmem [shape: bf16[32,32], index: 8, kind: input, shape index: {}]   ;;  %s1738_s9 = inlined_call_operand.vmem [shape: f32[1,32], index: 9, kind: input, shape index: {}]   ;;  %s1739_s10 = inlined_call_operand.vmem [shape: bf16[32,64], index: 10, kind: input, shape index: {}]   ;;  %s1740_s11 = inlined_call_operand.vmem [shape: f32[1,64], index: 11, kind: input, shape index: {}]   ;;  %s1741_s12 = inlined_call_operand.vmem [shape: bf16[2,16,32], index: 12, kind: output, shape index: {0}]   ;;  %s1742_s13 = inlined_call_operand.vmem [shape: bf16[2,1,64], index: 13, kind: output, shape index: {1}]  }
   0x1 LB: > { %s1221_s26 = sadd.s32 4294967295, %s1411_s25   ;;  %p1225_p0 = scmp.ge.s32.totalorder %s1411_s25, 1  ;;  %s1411_s25 = sphi %s1491_s25, %s24_s25  }
   0x2   : > { %p400_p1 = scmp.lt.s32.totalorder %s1411_s25, 3 }
   0x4   : > { %p401_p2 = pnand %p1225_p0, %p400_p1 }
   0x5   : > { %p452_p3 = scmp.lt.s32.totalorder (!%p401_p2), %s1221_s26, 1  ;;  %v1413_v0 = vmov (!%p401_p2), 0   ;;  %vm981_vm0 = vcmask (!%p401_p2), 7168   ;;  %v1380_v6 = vld [vmem:[%s1731_s2] sm:$0xff] (!%p401_p2)   ;;  %v1414_v7 = vmov (!%p401_p2), 0.0   ;;  %v1381_v8 = vld [vmem:[%s1731_s2 + $0x8] sm:$0xff] (!%p401_p2)   ;;  %v473_v9 = vlaneseq (!%p401_p2) }
   0x6   : > { %404 = sbr.rel (%p401_p2) target bundleno = 1317 (0x525), region = 68  ;;  %1343 = vset.pattern.permute.xlu0 (!%p401_p2), %v1413_v0  ;;  %844 = vmatprep.subr.bf16.mxu1 (!%p401_p2), %v1413_v0  ;;  %v1382_v11 = vld [vmem:[%s1731_s2 + $0x10] sm:$0xff] (!%p401_p2)   ;;  %v1383_v18 = vld [vmem:[%s1731_s2 + $0x18] sm:$0xff] (!%p401_p2)   ;;  %v1384_v27 = vld [vmem:[%s1731_s2 + $0x20] sm:$0xff] (!%p401_p2)   ;;  %vm1416_vm8 = vmmov (!%p401_p2), 0   ;;  %s1417_s14 = smov (!%p401_p2), 48  }
   0x7   : > { %1379 = vset.pattern.permute.xlu1 (!%p401_p2), %v1413_v0  ;;  %1289 = vmatprep.subr.bf16.mxu0 (!%p401_p2), %v1414_v7  ;;  %v1528_v12 = vshrl.u32 (!%p401_p2), %v473_v9, 7  ;;  %s1418_s15 = smov (!%p401_p2), 16   ;;  %s1419_s16 = smov (!%p401_p2), 64   ;;  %vm599_vm10 = vcmask (!%p401_p2), 130048   ;;  %vm602_vm11 = vcmask (!%p401_p2), 261120   ;;  %vm605_vm12 = vcmask (!%p401_p2), 392192  }
   0x8   : > { %1290 = vmatpush3.bf16.msra.mxu0 (!%p401_p2), %v1380_v6  ;;  %1299 = vmatprep.mubr.msk.bf16.mxu0 (!%p401_p2), %vm1416_vm8, %v1414_v7  ;;  %vm608_vm13 = vcmask (!%p401_p2), 523264   ;;  %vm648_vm14 = vcmask (!%p401_p2), 654336   ;;  %v1386_v6 = vld [vmem:[%s1733_s4 + $0x8] sm:$0xff] (!%p401_p2)   ;;  %v1388_v9 = vld [vmem:[%s1733_s4 + $0x18] sm:$0xff] (!%p401_p2)   ;;  %vm770_vm15 = vcmask (!%p401_p2), 785408  }
   0x9   : > { %1291 = vmatprep.subr.bf16.mxu0 (!%p401_p2), %v1414_v7  ;;  %v1534_v16 = vadd.s32 (!%p401_p2), 8, %v1528_v12  ;;  %vm537_vm1 = vcmp.lt.s32.totalorder (!%p401_p2), %v1528_v12, 7  ;;  %vm522_vm2 = vcmp.lt.s32.totalorder (!%p401_p2), %v1528_v12, 1  ;;  %vm525_vm4 = vcmp.ge.s32.totalorder (!%p401_p2), %v1528_v12, 1 }
   0xa   : > { %vm554_vm5 = vcmp.lt.s32.totalorder (!%p401_p2), %v1528_v12, 6  ;;  %vm505_vm7 = vcmp.lt.s32.totalorder (!%p401_p2), %v1528_v12, 2  ;;  %vm508_vm9 = vcmp.ge.s32.totalorder (!%p401_p2), %v1528_v12, 2  ;;  %v1395_v12 = vld [vmem:[%s1735_s6] sm:$0xff] (!%p401_p2)  }
   0xb   : > { %vm543_vm3 = vcmp.lt.s32.totalorder (!%p401_p2), %v1534_v16, 15  ;;  %vm558_vm6 = vcmp.lt.s32.totalorder (!%p401_p2), %v1534_v16, 14 }
   0xc   : > { %1292 = vmatpush3.bf16.msra.mxu0 (!%p401_p2), %v1381_v8  ;;  %v1387_v8 = vld [vmem:[%s1733_s4 + $0x10] sm:$0xff] (!%p401_p2)  }
   0xd   : > { %s1744_s26 = smov (!%p452_p3, %s1221_s26), 1  ;;  %1293 = vmatprep.subr.bf16.mxu0 %v1414_v7 }
   0xe   : > { %s1266_s27 = sshll.u32 %s1744_s26, 4  ;;  %s1265_s18 = sshll.u32 %s1744_s26, 3 }
   0xf   : > { %s461_s30 = scalar_lea.vmem %s1730_s1, %s1266_s27  ;;  %s456_s21 = scalar_lea.vmem %s1729_s0, %s1265_s18 }
  0x10   : > { %v471_v1 = vld [vmem:[%s461_s30] sm:$0xff]  ;;  %v472_v2 = vld [vmem:[%s461_s30 + $0x8] sm:$0xff]  ;;  %1294 = vmatpush3.bf16.msra.mxu0 %v1382_v11  ;;  %s1415_s30 = smov 32   ;;  %s466_s19 = scalar_lea.vmem %s1741_s12, %s1265_s18 }
  0x11   : > { %482 = vperm.xlu0 %1343, %v471_v1   ;;  %v982_v3 = vsel %vm981_vm0, %v471_v1, 0.0  ;;  %v983_v4 = vsel %vm981_vm0, %v472_v2, 0.0  ;;  %v1271_v10 = vld [vmem:[%s456_s21] sm:$0xff]   ;;  %1295 = vmatprep.subr.bf16.mxu0 %v1414_v7  ;;  %v1390_v11 = vld [vmem:[%s1733_s4 + $0x28] sm:$0xff]   ;;  %vm967_vm0 = vcmask 257024   ;;  %s469_s27 = scalar_lea.vmem %s1742_s13, %s1744_s26 }
  0x12   : > { %v1508_v5 = vadd.f32 %v983_v4, %v982_v3  ;;  %v1272_v13 = vunpack.c.l.bf16 %v1271_v10  ;;  %v1273_v15 = vunpack.c.h.bf16 %v1271_v10  ;;  %v1385_v4 = vld [vmem:[%s1733_s4] sm:$0xff]  }
  0x13   : > { %845 = vmatpush1.bf16.msra.mxu1 %v1385_v4  ;;  %v1389_v10 = vld [vmem:[%s1733_s4 + $0x20] sm:$0xff]  }
  0x14   : > { %1296 = vmatpush3.bf16.msra.mxu0 %v1383_v18  ;;  %846 = vmatprep.subr.bf16.mxu1 %v1413_v0 }
  0x15   : > { %487 = vperm.xlu0 %1343, %v472_v2   ;;  %1297 = vmatprep.subr.bf16.mxu0 %v1414_v7 }
  0x17   : > { %847 = vmatpush1.bf16.msra.mxu1 %v1386_v6 }
  0x18   : > { %1298 = vmatpush3.bf16.msra.mxu0 %v1384_v27  ;;  %848 = vmatprep.subr.bf16.mxu1 %v1413_v0  ;;  %v1393_v27 = vld [vmem:[%s1733_s4 + $0x40] sm:$0xff]  }
  0x19   : > { %1303 = vmatprep.subr.bf16.mxu0 %v1414_v7 }
  0x1b   : > { %849 = vmatpush1.bf16.msra.mxu1 %v1387_v8 }
  0x1c   : > { %850 = vmatprep.subr.bf16.mxu1 %v1413_v0 }
  0x1f   : > { %851 = vmatpush1.bf16.msra.mxu1 %v1388_v9 }
  0x20   : > { %852 = vmatprep.subr.bf16.mxu1 %v1413_v0 }
  0x23   : > { %853 = vmatpush1.bf16.msra.mxu1 %v1389_v10 }
  0x24   : > { %854 = vmatprep.subr.bf16.mxu1 %v1413_v0 }
  0x27   : > { %855 = vmatpush1.bf16.msra.mxu1 %v1390_v11 }
  0x28   : > { %856 = vmatprep.subr.bf16.mxu1 %v1413_v0 }
  0x90   : > { %v1531_v14 = vpop.permute.xlu0 %482 }
  0x91   : > { %v490_v17 = vmul.f32 %v1272_v13, %v1531_v14  ;;  %v1391_v13 = vld [vmem:[%s1733_s4 + $0x30] sm:$0xff]  }
  0x92   : > { %857 = vmatpush1.bf16.msra.mxu1 %v1391_v13 }
  0x93   : > { %v535_v21 = vrot.slane %v490_v17, 1  ;;  %v520_v22 = vrot.slane %v490_v17, 7  ;;  %v552_v28 = vrot.slane %v490_v17, 2  ;;  %v503_v30 = vrot.slane %v490_v17, 6  ;;  %858 = vmatprep.subr.bf16.mxu1 %v1413_v0 }
  0x94   : > { %v1540_v19 = vpop.permute.xlu0 %487 }
  0x95   : > { %v491_v20 = vmul.f32 %v1273_v15, %v1540_v19  ;;  %v1232_v15 = vld [vmem:[%s1732_s3] ss:$0 sm:$0xff] }
  0x97   : > { %v1344_v23 = vpack.i.bf16 %v491_v20, %v490_v17  ;;  %v536_v24 = vrot.slane %v491_v20, 1  ;;  %v521_v25 = vrot.slane %v491_v20, 7  ;;  %v553_v26 = vrot.slane %v491_v20, 2  ;;  %v1392_v17 = vld [vmem:[%s1733_s4 + $0x38] sm:$0xff]  }
  0x98   : > { %v504_v29 = vrot.slane %v491_v20, 6  ;;  %859 = vmatpush1.bf16.msra.mxu1 %v1392_v17  ;;  %v1396_v17 = vld [vmem:[%s1735_s6 + $0x8] sm:$0xff]  }
  0x99   : > { %1345 = vrot.lane.b32.xlu1 %v1344_v23, %s1415_s30  ;;  %v538_v31 = vsel %vm537_vm1, %v535_v21, %v536_v24  ;;  %v539_v32 = vsel %vm537_vm1, %v536_v24, %v535_v21  ;;  %v523_v33 = vsel %vm522_vm2, %v520_v22, %v521_v25  ;;  %v524_v34 = vsel %vm522_vm2, %v521_v25, %v520_v22 }
  0x9a   : > { %v551_v35 = vsel %vm543_vm3, %v539_v32, 0.0  ;;  %v533_v36 = vsel %vm525_vm4, %v524_v34, 0.0  ;;  %v556_v37 = vsel %vm554_vm5, %v553_v26, %v552_v28  ;;  %v506_v40 = vsel %vm505_vm7, %v503_v30, %v504_v29  ;;  %860 = vmatprep.subr.bf16.mxu1 %v1413_v0 }
  0x9b   : > { %v1354_v38 = vpack.i.bf16 %v551_v35, %v538_v31  ;;  %v1349_v39 = vpack.i.bf16 %v523_v33, %v533_v36  ;;  %v555_v41 = vsel %vm554_vm5, %v552_v28, %v553_v26  ;;  %v566_v42 = vsel %vm558_vm6, %v556_v37, 0.0  ;;  %v1394_v31 = vld [vmem:[%s1733_s4 + $0x48] sm:$0xff]  }
  0x9c   : > { %v507_v43 = vsel %vm505_vm7, %v504_v29, %v503_v30  ;;  %v1359_v44 = vpack.i.bf16 %v566_v42, %v555_v41  ;;  %v985_v22 = vrot.slane %v1508_v5, 4  ;;  %861 = vmatpush1.bf16.msra.mxu1 %v1393_v27 }
  0x9d   : > { %1355 = vrot.lane.b32.xlu0 %v1354_v38, %s1417_s14  ;;  %1350 = vrot.lane.b32.xlu1 %v1349_v39, %s1418_s15  ;;  %v518_v52 = vsel %vm508_vm9, %v507_v43, 0.0 }
  0x9e   : > { %v986_v30 = vadd.f32 %v985_v22, %v1508_v5  ;;  %862 = vmatprep.subr.bf16.mxu1 %v1413_v0 }
  0xa0   : > { %v987_v39 = vrot.slane %v986_v30, 2  ;;  %863 = vmatpush1.bf16.msra.mxu1 %v1394_v31  ;;  %v1397_v31 = vld [vmem:[%s1737_s8] sm:$0xff]  }
  0xa1   : > { %1360 = vrot.lane.b32.xlu1 %v1359_v44, %s1419_s16 }
 0x10b   : > { %v1346_v45 = vpop.permute.xlu1 %1345 }
 0x10c   : > { %v1348_v50 = vunpack.i.h.bf16 %v1346_v45  ;;  %v1347_v51 = vunpack.i.l.bf16 %v1346_v45 }
 0x10f   : > { %v1356_v46 = vpop.permute.xlu0 %1355  ;;  %v1351_v47 = vpop.permute.xlu1 %1350 }
 0x110   : > { %v1353_v48 = vunpack.i.h.bf16 %v1351_v47  ;;  %v1352_v49 = vunpack.i.l.bf16 %v1351_v47  ;;  %v1358_v53 = vunpack.i.h.bf16 %v1356_v46  ;;  %v1357_v54 = vunpack.i.l.bf16 %v1356_v46 }
 0x112   : > { %v600_v55 = vsel %vm599_vm10, %v518_v52, %v1352_v49  ;;  %v601_v56 = vsel %vm599_vm10, %v506_v40, %v1353_v48 }
 0x113   : > { %v603_v57 = vsel %vm602_vm11, %v600_v55, %v1347_v51  ;;  %v604_v58 = vsel %vm602_vm11, %v601_v56, %v1348_v50  ;;  %v1361_v59 = vpop.permute.xlu1 %1360  ;;  %v988_v55 = vadd.f32 %v987_v39, %v986_v30 }
 0x114   : > { %v1363_v60 = vunpack.i.h.bf16 %v1361_v59  ;;  %v1362_v61 = vunpack.i.l.bf16 %v1361_v59  ;;  %v606_v62 = vsel %vm605_vm12, %v603_v57, %v1357_v54  ;;  %v607_v63 = vsel %vm605_vm12, %v604_v58, %v1358_v53 }
 0x115   : > { %v989_v56 = vrot.slane %v988_v55, 1 }
 0x116   : > { %v609_v1 = vsel %vm608_vm13, %v606_v62, %v1362_v61  ;;  %v610_v2 = vsel %vm608_vm13, %v607_v63, %v1363_v60 }
 0x117   : > { %v611_v3 = vpack.c.bf16 %v610_v2, %v609_v1  ;;  %v990_v57 = vadd.f32 %v989_v56, %v988_v55 }
 0x119   : > { %1300 = vmatmul.mubr.msk.bf16.vlgmr.msra.gmra.mrb[0].mxu0 %vm648_vm14, %v611_v3  ;;  %v991_v58 = vmax.f32 %v990_v57, 1.0 }
 0x11a   : > { %1307 = vmatprep.mubr.msk.bf16.mxu0 %vm1416_vm8, %v1414_v7  ;;  %1304 = vmatpush3.bf16.msra.mxu0 %v1395_v12 }
 0x11b   : > { %1305 = vmatprep.subr.bf16.mxu0 %v1414_v7 }
 0x11e   : > { %1306 = vmatpush3.bf16.msra.mxu0 %v1396_v17 }
 0x11f   : > { %1311 = vmatprep.subr.bf16.mxu0 %v1414_v7 }
 0x1ec   : > { %v686_v18 = vpop.f32.mrb[0].mxu0 }
 0x1ed   : > { %v687_v20 = vadd.f32 %v1232_v15, %v686_v18  ;;  %v1301_v21 = vpop.f32.mrb[1].mxu0  ;;  %v1239_v18 = vld [vmem:[%s1734_s5] ss:$0 sm:$0xff] }
 0x1ee   : > { %v689_v23 = vpop.f32.mrb[2].mxu0 }
 0x1ef   : > { %v693_v24 = vmax.f32 %v687_v20, 0.0  ;;  %v690_v25 = vadd.f32 %v1232_v15, %v689_v23  ;;  %v1302_v26 = vpop.f32.mrb[3].mxu0 }
 0x1f1   : > { %v695_v28 = vmul.f32 %v693_v24, %v1531_v14  ;;  %v694_v29 = vmax.f32 %v690_v25, 0.0 }
 0x1f3   : > { %v696_v32 = vmul.f32 %v694_v29, %v1540_v19  ;;  %v736_v33 = vrot.slane %v695_v28, 2  ;;  %v724_v34 = vrot.slane %v695_v28, 7  ;;  %v730_v40 = vrot.slane %v695_v28, 1 }
 0x1f4   : > { %v718_v41 = vrot.slane %v695_v28, 6 }
 0x1f5   : > { %v1364_v35 = vpack.i.bf16 %v696_v32, %v695_v28  ;;  %v737_v36 = vrot.slane %v696_v32, 2  ;;  %v725_v37 = vrot.slane %v696_v32, 7  ;;  %v731_v38 = vrot.slane %v696_v32, 1 }
 0x1f6   : > { %v719_v42 = vrot.slane %v696_v32, 6 }
 0x1f7   : > { %1365 = vrot.lane.b32.xlu1 %v1364_v35, %s1419_s16  ;;  %v738_v5 = vsel %vm554_vm5, %v736_v33, %v737_v36  ;;  %v739_v43 = vsel %vm554_vm5, %v737_v36, %v736_v33  ;;  %v726_v0 = vsel %vm522_vm2, %v724_v34, %v725_v37  ;;  %v727_v44 = vsel %vm522_vm2, %v725_v37, %v724_v34  ;;  %s1420_s16 = smov 96  }
 0x1f8   : > { %v741_v45 = vsel %vm558_vm6, %v739_v43, 0.0  ;;  %v728_v46 = vsel %vm525_vm4, %v727_v44, 0.0  ;;  %v732_v47 = vsel %vm537_vm1, %v730_v40, %v731_v38  ;;  %v733_v48 = vsel %vm537_vm1, %v731_v38, %v730_v40  ;;  %v1398_v38 = vld [vmem:[%s1737_s8 + $0x8] sm:$0xff]  }
 0x1f9   : > { %v774_v49 = vpack.c.bf16 %v741_v45, %v738_v5  ;;  %v1369_v50 = vpack.i.bf16 %v726_v0, %v728_v46  ;;  %v735_v51 = vsel %vm543_vm3, %v733_v48, 0.0  ;;  %v720_v52 = vsel %vm505_vm7, %v718_v41, %v719_v42  ;;  %v1399_v46 = vld [vmem:[%s1739_s10] sm:$0xff]  }
 0x1fa   : > { %v1374_v53 = vpack.i.bf16 %v735_v51, %v732_v47  ;;  %v721_v54 = vsel %vm505_vm7, %v719_v42, %v718_v41  ;;  %v1400_v47 = vld [vmem:[%s1739_s10 + $0x8] sm:$0xff]   ;;  %v1251_v48 = vld [vmem:[%s1736_s7] ss:$0 sm:$0xff]  ;;  %vm1123_vm1 = vcmask 516096   ;;  %vm1124_vm2 = vsmask.f32 256 }
 0x1fb   : > { %1250 = vmatprep.mubr.msk.bf16.mxu1 %vm602_vm11, %v774_v49  ;;  %1370 = vrot.lane.b32.xlu0 %v1369_v50, %s1415_s30  ;;  %v722_v62 = vsel %vm508_vm9, %v721_v54, 0.0  ;;  %vm1125_vm3 = vmand %vm1123_vm1, %vm1124_vm2 }
 0x1fc   : > { %994 = vperm.xlu1 %1379, %v991_v58   ;;  %v1004_v58 = vld [vmem:[%s1738_s9] sm:$0x1] }
 0x1ff   : > { %1375 = vrot.lane.b32.xlu0 %v1374_v53, %s1420_s16 }
 0x269   : > { %v1366_v59 = vpop.permute.xlu1 %1365 }
 0x26a   : > { %v1368_v2 = vunpack.i.h.bf16 %v1366_v59  ;;  %v1367_v3 = vunpack.i.l.bf16 %v1366_v59 }
 0x26d   : > { %v1371_v16 = vpop.permute.xlu0 %1370 }
 0x26e   : > { %v1373_v60 = vunpack.i.h.bf16 %v1371_v16  ;;  %v1372_v61 = vunpack.i.l.bf16 %v1371_v16 }
 0x270   : > { %v766_v63 = vsel %vm602_vm11, %v722_v62, %v1372_v61  ;;  %v767_v1 = vsel %vm602_vm11, %v720_v52, %v1373_v60 }
 0x271   : > { %v1376_v4 = vpop.permute.xlu0 %1375  ;;  %v768_v9 = vsel %vm608_vm13, %v766_v63, %v1367_v3  ;;  %v769_v10 = vsel %vm608_vm13, %v767_v1, %v1368_v2 }
 0x272   : > { %v1378_v6 = vunpack.i.h.bf16 %v1376_v4  ;;  %v1377_v8 = vunpack.i.l.bf16 %v1376_v4  ;;  %v1126_v4 = vld [vmem:[%s469_s27] sm:$0x1] }
 0x274   : > { %v771_v11 = vsel %vm770_vm15, %v768_v9, %v1377_v8  ;;  %v772_v13 = vsel %vm770_vm15, %v769_v10, %v1378_v6 }
 0x275   : > { %v773_v15 = vpack.c.bf16 %v772_v13, %v771_v11 }
 0x277   : > { %877 = vmatmul.mubr.bf16.vlgmr.msra.gmra.mrb[0].mxu1 %v773_v15 }
 0x27b   : > { %v995_v34 = vpop.permute.xlu1 %994 }
 0x27c   : > { %1401 = vrcp.f32 %v995_v34 }
 0x286   : > { %v1402_v43 = vpop.eup %1401 }
 0x34a   : > { %v878_v20 = vpop.f32.mrb[0].mxu1 }
 0x34b   : > { %v879_v21 = vadd.f32 %v1239_v18, %v878_v20  ;;  %v880_v22 = vpop.f32.mrb[1].mxu1 }
 0x34c   : > { %v881_v23 = vpop.f32.mrb[2].mxu1 }
 0x34d   : > { %v885_v24 = vmax.f32 %v879_v21, 0.0  ;;  %v882_v25 = vadd.f32 %v1239_v18, %v881_v23  ;;  %v883_v26 = vpop.f32.mrb[3].mxu1 }
 0x34f   : > { %v887_v27 = vmul.f32 %v885_v24, %v1531_v14  ;;  %v886_v28 = vmax.f32 %v882_v25, 0.0 }
 0x351   : > { %v970_v29 = vmul.f32 %v887_v27, %v1531_v14  ;;  %v888_v30 = vmul.f32 %v886_v28, %v1540_v19 }
 0x353   : > { %v889_v32 = vpack.c.bf16 %v888_v30, %v887_v27  ;;  %v971_v33 = vmul.f32 %v888_v30, %v1540_v19  ;;  %v972_v35 = vsel %vm602_vm11, %v970_v29, 0.0 }
 0x355   : > { %v973_v36 = vsel %vm602_vm11, %v971_v33, 0.0  ;;  %1308 = vmatmul.mubr.msk.bf16.vlgmr.msra.gmra.mrb[4].mxu0 %vm602_vm11, %v889_v32 }
 0x356   : > { %v974_v37 = vadd.f32 %v973_v36, %v972_v35  ;;  %1312 = vmatpush3.bf16.msra.mxu0 %v1397_v31  ;;  %1315 = vmatprep.mubr.msk.bf16.mxu0 %vm1416_vm8, %v1414_v7 }
 0x357   : > { %1313 = vmatprep.subr.bf16.mxu0 %v1414_v7 }
 0x358   : > { %v975_v39 = vrot.slane %v974_v37, 4 }
 0x35a   : > { %v976_v40 = vadd.f32 %v975_v39, %v974_v37  ;;  %1314 = vmatpush3.bf16.msra.mxu0 %v1398_v38 }
 0x35b   : > { %1319 = vmatprep.subr.bf16.mxu0 %v1414_v7 }
 0x35c   : > { %v977_v41 = vrot.slane %v976_v40, 2 }
 0x35e   : > { %v978_v42 = vadd.f32 %v977_v41, %v976_v40 }
 0x360   : > { %v979_v5 = vrot.slane %v978_v42, 1 }
 0x362   : > { %v980_v0 = vadd.f32 %v979_v5, %v978_v42 }
 0x364   : > { %v998_v44 = vmul.f32 %v1402_v43, %v980_v0 }
 0x366   : > { %v999_v45 = vpack.c.bf16 %v998_v44, %v998_v44 }
 0x368   : > { %1316 = vmatmul.mubr.msk.bf16.vlgmr.msra.gmra.mrb[8].mxu0 %vm602_vm11, %v999_v45 }
 0x369   : > { %1323 = vmatprep.mubr.msk.bf16.mxu0 %vm1416_vm8, %v1414_v7  ;;  %1320 = vmatpush3.bf16.msra.mxu0 %v1399_v46 }
 0x36a   : > { %1321 = vmatprep.subr.bf16.mxu0 %v1414_v7 }
 0x36d   : > { %1322 = vmatpush3.bf16.msra.mxu0 %v1400_v47 }
 0x428   : > { %v950_v49 = vpop.f32.mrb[4].mxu0 }
 0x429   : > { %v951_v50 = vadd.f32 %v1251_v48, %v950_v49  ;;  %v1309_v51 = vpop.f32.mrb[5].mxu0 }
 0x42a   : > { %v953_v52 = vpop.f32.mrb[6].mxu0 }
 0x42b   : > { %v957_v53 = vmul.f32 %v951_v50, %v1531_v14  ;;  %v954_v54 = vadd.f32 %v1251_v48, %v953_v52  ;;  %v1310_v55 = vpop.f32.mrb[7].mxu0 }
 0x42d   : > { %v1268_v7 = vpack.c.bf16 %v957_v53, %v957_v53  ;;  %v958_v56 = vmul.f32 %v954_v54, %v1540_v19  ;;  %v1066_v19 = vld [vmem:[%s1740_s11] sm:$0x1] }
 0x42f   : > { %968 = vst.msk [vmem:[%s466_s19] sm:$0xf] %vm967_vm0, %v1268_v7  ;;  %v1269_v57 = vpack.c.bf16 %v958_v56, %v958_v56 }
 0x431   : > { %969 = vst.msk [vmem:[%s466_s19 + $0x4] sm:$0xf] %vm967_vm0, %v1269_v57 }
 0x43b   : > { %v1054_v14 = vpop.f32.mrb[8].mxu0 }
 0x43c   : > { %v1055_v16 = vadd.f32 %v1054_v14, %v1004_v58  ;;  %v1317_v59 = vpop.f32.mrb[9].mxu0 }
 0x43d   : > { %v1057_v60 = vpop.f32.mrb[10].mxu0 }
 0x43e   : > { %1403 = vtanh.f32 %v1055_v16  ;;  %v1318_v61 = vpop.f32.mrb[11].mxu0 }
 0x448   : > { %v1404_v62 = vpop.eup %1403 }
 0x449   : > { %v1061_v63 = vpack.c.bf16 %v1404_v62, %v1404_v62 }
 0x44b   : > { %1324 = vmatmul.mubr.msk.bf16.vlgmr.msra.gmra.mrb[12].mxu0 %vm602_vm11, %v1061_v63 }
 0x51e   : > { %v1116_v1 = vpop.f32.mrb[12].mxu0 }
 0x51f   : > { %v1117_v2 = vadd.f32 %v1116_v1, %v1066_v19  ;;  %v1325_v3 = vpop.f32.mrb[13].mxu0 }
 0x520   : > { %v1119_v6 = vpop.f32.mrb[14].mxu0 }
 0x521   : > { %v1122_v8 = vpack.c.bf16 %v1117_v2, %v1117_v2  ;;  %v1326_v9 = vpop.f32.mrb[15].mxu0 }
 0x523   : > { %v1127_v10 = vsel %vm1125_vm3, %v1122_v8, %v1126_v4 }
 0x524   : > { %1128 = vst [vmem:[%s469_s27] sm:$0x1] %v1127_v10 }
 0x525 PF: > { %s24_s25 = sadd.s32 1, %s1411_s25  }
 0x526   : > { %p21_p4 = scmp.ge.s32.totalorder %s24_s25, 4  }
 0x528   :  { %23 = sbr.rel (!%p21_p4) target bundleno = 1 (0x1), region = 113 }

// kernel: _lambda_.5
= control target key start
LH: loop header
LB: loop body
LE: loop exit
PB: predicated region body
PF: predicated region fallthrough
CT: control target
= control target key end

     0   :  { %s1356_s17 = smov 0   ;;  %s1549_s0 = inlined_call_operand.vmem [shape: bf16[2,16,27], index: 0, kind: input, shape index: {}]   ;;  %s1550_s1 = inlined_call_operand.vmem [shape: bf16[2,16,32], index: 1, kind: input, shape index: {}]   ;;  %s1551_s2 = inlined_call_operand.vmem [shape: bf16[2,1,32], index: 2, kind: input, shape index: {}]   ;;  %s1552_s3 = inlined_call_operand.vmem [shape: f32[2,16,1], index: 3, kind: input, shape index: {}]   ;;  %s1553_s4 = inlined_call_operand.vmem [shape: bf16[27,32], index: 4, kind: input, shape index: {}]   ;;  %s1554_s5 = inlined_call_operand.vmem [shape: f32[1,32], index: 5, kind: input, shape index: {}]   ;;  %s1555_s6 = inlined_call_operand.vmem [shape: bf16[2,96,32], index: 6, kind: input, shape index: {}]   ;;  %s1556_s7 = inlined_call_operand.vmem [shape: f32[2,1,32], index: 7, kind: input, shape index: {}]   ;;  %s1557_s8 = inlined_call_operand.vmem [shape: bf16[32,18], index: 8, kind: input, shape index: {}]   ;;  %s1558_s9 = inlined_call_operand.vmem [shape: f32[1,18], index: 9, kind: input, shape index: {}]   ;;  %s1559_s10 = inlined_call_operand.vmem [shape: bf16[2,16,18], index: 10, kind: output, shape index: {0}]   ;;  %s1560_s11 = inlined_call_operand.vmem [shape: f32[2,1,32], index: 11, kind: output, shape index: {1}]  }
   0x1 LB: > { %s1087_s18 = sadd.s32 4294967295, %s1288_s17   ;;  %p1091_p0 = scmp.ge.s32.totalorder %s1288_s17, 1  ;;  %s1288_s17 = sphi %s1356_s17, %s22_s17  }
   0x2   : > { %p368_p1 = scmp.lt.s32.totalorder %s1288_s17, 3 }
   0x4   : > { %p369_p2 = pnand %p1091_p0, %p368_p1 }
   0x5   : > { %v1255_v0 = vld [vmem:[%s1553_s4] sm:$0xff] (!%p369_p2)   ;;  %v1290_v1 = vmov (!%p369_p2), 0.0   ;;  %v1256_v2 = vld [vmem:[%s1553_s4 + $0x8] sm:$0x3f] (!%p369_p2)   ;;  %vm489_vm0 = vcmask (!%p369_p2), 1044480   ;;  %vm490_vm1 = vcmask (!%p369_p2), 1045504   ;;  %v453_v18 = vlaneseq (!%p369_p2) }
   0x6   : > { %372 = sbr.rel (%p369_p2) target bundleno = 1172 (0x494), region = 60  ;;  %1172 = vmatprep.subr.bf16.mxu0 (!%p369_p2), %v1290_v1  ;;  %1180 = vmatprep.subr.bf16.mxu1 (!%p369_p2), %v1290_v1  ;;  %p424_p3 = scmp.lt.s32.totalorder (!%p369_p2), %s1087_s18, 1  ;;  %v1291_v3 = vmov (!%p369_p2), 65535   ;;  %vm1292_vm2 = vmmov (!%p369_p2), 0   ;;  %v1293_v6 = vmov (!%p369_p2), 0   ;;  %vm485_vm3 = vcmask (!%p369_p2), 220160  }
   0x7   : > { %1173 = vmatpush3.bf16.msra.mxu0 (!%p369_p2), %v1255_v0  ;;  %v491_v4 = vsel (!%p369_p2), %vm489_vm0, 4294967295, %v1291_v3  ;;  %1176 = vmatprep.mubr.msk.bf16.mxu0 (!%p369_p2), %vm1292_vm2, %v1290_v1  ;;  %vm873_vm4 = vcmask (!%p369_p2), 7168   ;;  %v1258_v14 = vld [vmem:[%s1555_s6] sm:$0xff] (!%p369_p2)   ;;  %v1259_v15 = vld [vmem:[%s1555_s6 + $0x8] sm:$0xff] (!%p369_p2)   ;;  %v1260_v16 = vld [vmem:[%s1555_s6 + $0x10] sm:$0xff] (!%p369_p2)   ;;  %v1419_v19 = vshrl.u32 (!%p369_p2), %v453_v18, 7 }
   0x8   : > { %1174 = vmatprep.subr.bf16.mxu0 (!%p369_p2), %v1290_v1  ;;  %v492_v5 = vsel (!%p369_p2), %vm490_vm1, %v491_v4, 0  ;;  %1234 = vset.pattern.permute.xlu0 (!%p369_p2), %v1293_v6  ;;  %v1261_v17 = vld [vmem:[%s1555_s6 + $0x18] sm:$0xff] (!%p369_p2)   ;;  %v1100_v24 = vld [vmem:[%s1554_s5] ss:$0 sm:$0xff] (!%p369_p2)  ;;  %v1263_v37 = vld [vmem:[%s1555_s6 + $0x28] sm:$0xff] (!%p369_p2)   ;;  %s1294_s16 = smov (!%p369_p2), 32  }
   0x9   : > { %1192 = vmatprep.mubr.msk.bf16.mxu1 (!%p369_p2), %vm1292_vm2, %v1290_v1  ;;  %v494_v7 = vand.u32 (!%p369_p2), %v1256_v2, %v492_v5  ;;  %1181 = vmatpush3.bf16.msra.mxu1 (!%p369_p2), %v1258_v14  ;;  %v547_v23 = vsub.s32 (!%p369_p2), 0, %v1419_v19  ;;  %v1262_v27 = vld [vmem:[%s1555_s6 + $0x20] sm:$0xff] (!%p369_p2)   ;;  %v1435_v40 = vadd.s32 (!%p369_p2), 8, %v1419_v19  ;;  %vm595_vm5 = vcmp.lt.s32.totalorder (!%p369_p2), %v1419_v19, 7  ;;  %s1295_s19 = smov (!%p369_p2), 64   ;;  %v1264_v5 = vld [vmem:[%s1555_s6 + $0x30] sm:$0xff] (!%p369_p2)  }
   0xa   : > { %1182 = vmatprep.subr.bf16.mxu1 (!%p369_p2), %v1290_v1  ;;  %vm578_vm7 = vcmp.lt.s32.totalorder (!%p369_p2), %v1419_v19, 1  ;;  %vm581_vm8 = vcmp.ge.s32.totalorder (!%p369_p2), %v1419_v19, 1  ;;  %vm626_vm9 = vcmask (!%p369_p2), 261120   ;;  %vm629_vm10 = vcmask (!%p369_p2), 523264   ;;  %v1265_v6 = vld [vmem:[%s1555_s6 + $0x38] sm:$0xff] (!%p369_p2)   ;;  %v1271_v19 = vld [vmem:[%s1557_s8 + $0x8] sm:$0xff] (!%p369_p2)  }
   0xb   : > { %1175 = vmatpush3.bf16.msra.mxu0 (!%p369_p2), %v494_v7  ;;  %vm601_vm6 = vcmp.lt.s32.totalorder (!%p369_p2), %v1435_v40, 15  ;;  %vm675_vm11 = vcmask (!%p369_p2), 785408   ;;  %v1266_v7 = vld [vmem:[%s1555_s6 + $0x40] sm:$0xff] (!%p369_p2)   ;;  %vm891_vm12 = vcmask (!%p369_p2), 253952   ;;  %vm971_vm13 = vcmask (!%p369_p2), 142336  }
   0xc   : > { %1196 = vmatprep.subr.bf16.mxu0 (!%p369_p2), %v1290_v1 }
   0xd   : > { %s1562_s18 = smov (!%p424_p3, %s1087_s18), 1  ;;  %1183 = vmatpush3.bf16.msra.mxu1 %v1259_v15 }
   0xe   : > { %s1380_s23 = sshll.u32 %s1562_s18, 3  ;;  %s1144_s27 = sshll.u32 %s1562_s18, 4  ;;  %1184 = vmatprep.subr.bf16.mxu1 %v1290_v1 }
   0xf   : > { %s428_s26 = scalar_lea.vmem %s1549_s0, %s1380_s23  ;;  %s441_s30 = scalar_lea.vmem %s1552_s3, %s1144_s27 }
  0x10   : > { %v1257_v8 = vld [vmem:[%s428_s26] sm:$0xff]   ;;  %v452_v10 = vld [vmem:[%s441_s30 + $0x8] sm:$0xff]  ;;  %s436_s25 = scalar_lea.vmem %s1551_s2, %s1562_s18  ;;  %s433_s28 = scalar_lea.vmem %s1550_s1, %s1380_s23 }
  0x11   : > { %v451_v9 = vld [vmem:[%s441_s30] sm:$0xff]  ;;  %1177 = vmatmul.mubr.msk.bf16.vlgmr.msra.gmra.mrb[0].mxu0 %vm485_vm3, %v1257_v8  ;;  %v875_v12 = vsel %vm873_vm4, %v452_v10, 0.0  ;;  %1185 = vmatpush3.bf16.msra.mxu1 %v1260_v16  ;;  %v1267_v8 = vld [vmem:[%s1555_s6 + $0x48] sm:$0xff]   ;;  %s449_s27 = scalar_lea.vmem %s1560_s11, %s1562_s18  ;;  %s446_s13 = scalar_lea.vmem %s1559_s10, %s1380_s23 }
  0x12   : > { %553 = vperm.xlu0 %1234, %v451_v9   ;;  %v874_v11 = vsel %vm873_vm4, %v451_v9, 0.0  ;;  %1208 = vmatprep.mubr.msk.bf16.mxu0 %vm1292_vm2, %v1290_v1  ;;  %v543_v20 = vld [vmem:[%s436_s25] sm:$0x1] }
  0x13   : > { %v1391_v13 = vadd.f32 %v875_v12, %v874_v11  ;;  %1186 = vmatprep.subr.bf16.mxu1 %v1290_v1  ;;  %v1149_v21 = vld [vmem:[%s433_s28] sm:$0xff]   ;;  %v544_v22 = vunpack.c.l.bf16 %v543_v20  ;;  %1197 = vmatpush3.bf16.msra.mxu0 %v1264_v5 }
  0x14   : > { %v1150_v25 = vunpack.c.l.bf16 %v1149_v21  ;;  %v1151_v31 = vunpack.c.h.bf16 %v1149_v21  ;;  %1198 = vmatprep.subr.bf16.mxu0 %v1290_v1 }
  0x15   : > { %1187 = vmatpush3.bf16.msra.mxu1 %v1261_v17  ;;  %v548_v29 = vrot.slane %v544_v22, %v547_v23  ;;  %v877_v9 = vrot.slane %v1391_v13, 4  ;;  %v1268_v22 = vld [vmem:[%s1555_s6 + $0x50] sm:$0xff]  }
  0x16   : > { %558 = vperm.xlu0 %1234, %v452_v10   ;;  %1188 = vmatprep.subr.bf16.mxu1 %v1290_v1  ;;  %v1105_v10 = vld [vmem:[%s1556_s7] ss:$0 sm:$0xff] }
  0x17   : > { %1199 = vmatpush3.bf16.msra.mxu0 %v1265_v6  ;;  %v878_v11 = vadd.f32 %v877_v9, %v1391_v13  ;;  %v1269_v13 = vld [vmem:[%s1555_s6 + $0x58] sm:$0xff]  }
  0x18   : > { %1200 = vmatprep.subr.bf16.mxu0 %v1290_v1 }
  0x19   : > { %1189 = vmatpush3.bf16.msra.mxu1 %v1262_v27  ;;  %v879_v17 = vrot.slane %v878_v11, 2 }
  0x1a   : > { %1190 = vmatprep.subr.bf16.mxu1 %v1290_v1 }
  0x1b   : > { %1201 = vmatpush3.bf16.msra.mxu0 %v1266_v7  ;;  %v880_v21 = vadd.f32 %v879_v17, %v878_v11 }
  0x1c   : > { %1202 = vmatprep.subr.bf16.mxu0 %v1290_v1 }
  0x1d   : > { %1191 = vmatpush3.bf16.msra.mxu1 %v1263_v37  ;;  %v881_v23 = vrot.slane %v880_v21, 1 }
  0x1e   : > { %1212 = vmatprep.subr.bf16.mxu1 %v1290_v1 }
  0x1f   : > { %1203 = vmatpush3.bf16.msra.mxu0 %v1267_v8  ;;  %v882_v27 = vadd.f32 %v881_v23, %v880_v21 }
  0x20   : > { %1204 = vmatprep.subr.bf16.mxu0 %v1290_v1 }
  0x23   : > { %1205 = vmatpush3.bf16.msra.mxu0 %v1268_v22 }
  0x24   : > { %1206 = vmatprep.subr.bf16.mxu0 %v1290_v1 }
  0x27   : > { %1207 = vmatpush3.bf16.msra.mxu0 %v1269_v13 }
  0x91   : > { %v1428_v32 = vpop.permute.xlu0 %553 }
  0x95   : > { %v1439_v43 = vpop.permute.xlu0 %558 }
  0xe4   : > { %v530_v26 = vpop.f32.mrb[0].mxu0 }
  0xe5   : > { %v531_v28 = vadd.f32 %v1100_v24, %v530_v26  ;;  %v1178_v30 = vpop.f32.mrb[1].mxu0 }
  0xe6   : > { %v533_v33 = vpop.f32.mrb[2].mxu0 }
  0xe7   : > { %v541_v34 = vadd.f32 %v1150_v25, %v531_v28  ;;  %v534_v35 = vadd.f32 %v1100_v24, %v533_v33  ;;  %v1179_v36 = vpop.f32.mrb[3].mxu0 }
  0xe9   : > { %v549_v38 = vadd.f32 %v548_v29, %v541_v34  ;;  %v542_v39 = vadd.f32 %v1151_v31, %v534_v35  ;;  %v883_v35 = vmax.f32 %v882_v27, 1.0 }
  0xeb   : > { %v550_v41 = vadd.f32 %v548_v29, %v542_v39  ;;  %v561_v42 = vmul.f32 %v1428_v32, %v549_v38 }
  0xed   : > { %v562_v44 = vmul.f32 %v1439_v43, %v550_v41  ;;  %v576_v45 = vrot.slane %v561_v42, 7  ;;  %v593_v48 = vrot.slane %v561_v42, 1 }
  0xef   : > { %v1235_v46 = vpack.i.bf16 %v562_v44, %v561_v42  ;;  %v577_v47 = vrot.slane %v562_v44, 7  ;;  %v594_v49 = vrot.slane %v562_v44, 1 }
  0xf1   : > { %1236 = vrot.lane.b32.xlu1 %v1235_v46, %s1294_s16  ;;  %v596_v50 = vsel %vm595_vm5, %v593_v48, %v594_v49  ;;  %v597_v51 = vsel %vm595_vm5, %v594_v49, %v593_v48  ;;  %v579_v52 = vsel %vm578_vm7, %v576_v45, %v577_v47  ;;  %v580_v53 = vsel %vm578_vm7, %v577_v47, %v576_v45 }
  0xf2   : > { %v609_v54 = vsel %vm601_vm6, %v597_v51, 0.0  ;;  %v591_v60 = vsel %vm581_vm8, %v580_v53, 0.0 }
  0xf3   : > { %v1240_v55 = vpack.i.bf16 %v609_v54, %v596_v50 }
  0xf5   : > { %1241 = vrot.lane.b32.xlu1 %v1240_v55, %s1295_s19  ;;  %v1270_v55 = vld [vmem:[%s1557_s8] sm:$0xff]  }
 0x163   : > { %v1237_v56 = vpop.permute.xlu1 %1236 }
 0x164   : > { %v1239_v57 = vunpack.i.h.bf16 %v1237_v56  ;;  %v1238_v58 = vunpack.i.l.bf16 %v1237_v56  ;;  %v1126_v56 = vld [vmem:[%s1556_s7 + $0x1] ss:$0 sm:$0xff] }
 0x166   : > { %v627_v63 = vsel %vm626_vm9, %v591_v60, %v1238_v58  ;;  %v628_v0 = vsel %vm626_vm9, %v579_v52, %v1239_v57 }
 0x167   : > { %v1242_v59 = vpop.permute.xlu1 %1241 }
 0x168   : > { %v1244_v61 = vunpack.i.h.bf16 %v1242_v59  ;;  %v1243_v62 = vunpack.i.l.bf16 %v1242_v59 }
 0x16a   : > { %v630_v2 = vsel %vm629_vm10, %v627_v63, %v1243_v62  ;;  %v631_v3 = vsel %vm629_vm10, %v628_v0, %v1244_v61 }
 0x16b   : > { %v632_v4 = vpack.c.bf16 %v631_v3, %v630_v2 }
 0x16d   : > { %1193 = vmatmul.mubr.msk.bf16.vlgmr.msra.gmra.mrb[0].mxu1 %vm675_vm11, %v632_v4 }
 0x16e   : > { %1216 = vmatprep.mubr.msk.bf16.mxu1 %vm1292_vm2, %v1290_v1  ;;  %1213 = vmatpush3.bf16.msra.mxu1 %v1270_v55 }
 0x16f   : > { %1214 = vmatprep.subr.bf16.mxu1 %v1290_v1 }
 0x172   : > { %1215 = vmatpush3.bf16.msra.mxu1 %v1271_v19 }
 0x240   : > { %v713_v12 = vpop.f32.mrb[0].mxu1 }
 0x241   : > { %v714_v14 = vadd.f32 %v1105_v10, %v713_v12  ;;  %v1194_v15 = vpop.f32.mrb[1].mxu1 }
 0x242   : > { %v716_v16 = vpop.f32.mrb[2].mxu1 }
 0x243   : > { %1272 = vtanh.f32 %v714_v14  ;;  %v717_v18 = vadd.f32 %v1105_v10, %v716_v16  ;;  %v1195_v20 = vpop.f32.mrb[3].mxu1 }
 0x244   : > { %v1134_v20 = vld [vmem:[%s1558_s9] ss:$0 sm:$0xff] }
 0x245   : > { %1274 = vtanh.f32 %v717_v18 }
 0x24d   : > { %v1273_v24 = vpop.eup %1272 }
 0x24e   : > { %v722_v25 = vmul.f32 %v1273_v24, %v1428_v32 }
 0x24f   : > { %v1275_v26 = vpop.eup %1274 }
 0x250   : > { %v723_v28 = vmul.f32 %v1275_v26, %v1439_v43  ;;  %v745_v29 = vrot.slane %v722_v25, 1  ;;  %v739_v33 = vrot.slane %v722_v25, 7 }
 0x252   : > { %v1245_v30 = vpack.i.bf16 %v723_v28, %v722_v25  ;;  %v746_v31 = vrot.slane %v723_v28, 1  ;;  %v740_v34 = vrot.slane %v723_v28, 7 }
 0x254   : > { %1246 = vrot.lane.b32.xlu0 %v1245_v30, %s1294_s16  ;;  %v747_v36 = vsel %vm595_vm5, %v745_v29, %v746_v31  ;;  %v748_v37 = vsel %vm595_vm5, %v746_v31, %v745_v29  ;;  %v741_v38 = vsel %vm578_vm7, %v739_v33, %v740_v34  ;;  %v742_v39 = vsel %vm578_vm7, %v740_v34, %v739_v33 }
 0x255   : > { %v750_v41 = vsel %vm601_vm6, %v748_v37, 0.0  ;;  %v743_v48 = vsel %vm581_vm8, %v742_v39, 0.0 }
 0x256   : > { %v1250_v42 = vpack.i.bf16 %v750_v41, %v747_v36 }
 0x258   : > { %886 = vperm.xlu0 %1234, %v883_v35   ;;  %1251 = vrot.lane.b32.xlu1 %v1250_v42, %s1295_s19 }
 0x2c6   : > { %v1247_v44 = vpop.permute.xlu0 %1246 }
 0x2c7   : > { %v1249_v45 = vunpack.i.h.bf16 %v1247_v44  ;;  %v1248_v46 = vunpack.i.l.bf16 %v1247_v44 }
 0x2c9   : > { %v767_v51 = vsel %vm626_vm9, %v743_v48, %v1248_v46  ;;  %v768_v52 = vsel %vm626_vm9, %v741_v38, %v1249_v45 }
 0x2ca   : > { %v1252_v47 = vpop.permute.xlu1 %1251 }
 0x2cb   : > { %v1254_v49 = vunpack.i.h.bf16 %v1252_v47  ;;  %v1253_v50 = vunpack.i.l.bf16 %v1252_v47 }
 0x2cd   : > { %v769_v40 = vsel %vm629_vm10, %v767_v51, %v1253_v50  ;;  %v770_v53 = vsel %vm629_vm10, %v768_v52, %v1254_v49 }
 0x2ce   : > { %v771_v54 = vpack.c.bf16 %v770_v53, %v769_v40 }
 0x2d0   : > { %1209 = vmatmul.mubr.msk.bf16.vlgmr.msra.gmra.mrb[4].mxu0 %vm675_vm11, %v771_v54 }
 0x2d7   : > { %v887_v8 = vpop.permute.xlu0 %886 }
 0x3a3   : > { %v851_v57 = vpop.f32.mrb[4].mxu0 }
 0x3a4   : > { %v852_v58 = vadd.f32 %v1126_v56, %v851_v57  ;;  %v1210_v59 = vpop.f32.mrb[5].mxu0 }
 0x3a5   : > { %v854_v60 = vpop.f32.mrb[6].mxu0 }
 0x3a6   : > { %1276 = vtanh.f32 %v852_v58  ;;  %v855_v61 = vadd.f32 %v1126_v56, %v854_v60  ;;  %v1211_v62 = vpop.f32.mrb[7].mxu0 }
 0x3a8   : > { %1278 = vtanh.f32 %v855_v61 }
 0x3a9   : > { %1280 = vrcp.f32 %v887_v8 }
 0x3b0   : > { %v1277_v63 = vpop.eup %1276 }
 0x3b1   : > { %v860_v1 = vmul.f32 %v1277_v63, %v1428_v32 }
 0x3b2   : > { %v1279_v0 = vpop.eup %1278 }
 0x3b3   : > { %v862_v2 = vmul.f32 %v860_v1, %v1428_v32  ;;  %v861_v3 = vmul.f32 %v1279_v0, %v1439_v43  ;;  %v1281_v17 = vpop.eup %1280 }
 0x3b5   : > { %v863_v4 = vmul.f32 %v861_v3, %v1439_v43  ;;  %v893_v5 = vpack.c.bf16 %v861_v3, %v860_v1  ;;  %v864_v6 = vsel %vm626_vm9, %v862_v2, 0.0 }
 0x3b7   : > { %v865_v7 = vsel %vm626_vm9, %v863_v4, 0.0  ;;  %1217 = vmatmul.mubr.msk.bf16.vlgmr.msra.gmra.mrb[4].mxu1 %vm626_vm9, %v893_v5 }
 0x3b8   : > { %v866_v9 = vadd.f32 %v865_v7, %v864_v6 }
 0x3ba   : > { %v867_v10 = vrot.slane %v866_v9, 4 }
 0x3bc   : > { %v868_v11 = vadd.f32 %v867_v10, %v866_v9 }
 0x3be   : > { %v869_v12 = vrot.slane %v868_v11, 2 }
 0x3c0   : > { %v870_v14 = vadd.f32 %v869_v12, %v868_v11 }
 0x3c2   : > { %v871_v15 = vrot.slane %v870_v14, 1 }
 0x3c4   : > { %v872_v16 = vadd.f32 %v871_v15, %v870_v14 }
 0x3c6   : > { %v890_v18 = vmul.f32 %v1281_v17, %v872_v16 }
 0x3c8   : > { %892 = vst.msk [vmem:[%s449_s27] sm:$0x1] %vm891_vm12, %v890_v18 }
 0x48a   : > { %v954_v21 = vpop.f32.mrb[4].mxu1 }
 0x48b   : > { %v955_v22 = vadd.f32 %v1134_v20, %v954_v21  ;;  %v1218_v23 = vpop.f32.mrb[5].mxu1 }
 0x48c   : > { %v957_v13 = vpop.f32.mrb[6].mxu1 }
 0x48d   : > { %v961_v24 = vmul.f32 %v955_v22, %v1428_v32  ;;  %v958_v25 = vadd.f32 %v1134_v20, %v957_v13  ;;  %v1219_v26 = vpop.f32.mrb[7].mxu1 }
 0x48f   : > { %v1146_v27 = vpack.c.bf16 %v961_v24, %v961_v24  ;;  %v962_v28 = vmul.f32 %v958_v25, %v1439_v43 }
 0x491   : > { %972 = vst.msk [vmem:[%s446_s13] sm:$0xf] %vm971_vm13, %v1146_v27  ;;  %v1147_v29 = vpack.c.bf16 %v962_v28, %v962_v28 }
 0x493   : > { %973 = vst.msk [vmem:[%s446_s13 + $0x4] sm:$0xf] %vm971_vm13, %v1147_v29 }
 0x494 PF: > { %s22_s17 = sadd.s32 1, %s1288_s17  }
 0x495   : > { %p19_p4 = scmp.ge.s32.totalorder %s22_s17, 4  }
 0x497   :  { %21 = sbr.rel (!%p19_p4) target bundleno = 1 (0x1), region = 113 }

// kernel: _lambda_.6
= control target key start
LH: loop header
LB: loop body
LE: loop exit
PB: predicated region body
PF: predicated region fallthrough
CT: control target
= control target key end

     0   :  { %s1313_s25 = smov 0   ;;  %s1479_s0 = inlined_call_operand.vmem [shape: bf16[2,16,16], index: 0, kind: input, shape index: {}]   ;;  %s1480_s1 = inlined_call_operand.vmem [shape: bf16[2,16,16], index: 1, kind: input, shape index: {}]   ;;  %s1481_s2 = inlined_call_operand.vmem [shape: bf16[2,16,16], index: 2, kind: input, shape index: {}]   ;;  %s1482_s3 = inlined_call_operand.vmem [shape: f32[2,1,1], index: 3, kind: input, shape index: {}]   ;;  %s1483_s4 = inlined_call_operand.vmem [shape: f32[2,1,32], index: 4, kind: input, shape index: {}]   ;;  %s1484_s5 = inlined_call_operand.vmem [shape: bf16[2,1,32], index: 5, kind: input, shape index: {}]   ;;  %s1485_s6 = inlined_call_operand.vmem [shape: f32[2,16,1], index: 6, kind: input, shape index: {}]   ;;  %s1486_s7 = inlined_call_operand.vmem [shape: bf16[32,32], index: 7, kind: input, shape index: {}]   ;;  %s1487_s8 = inlined_call_operand.vmem [shape: f32[1,32], index: 8, kind: input, shape index: {}]   ;;  %s1488_s9 = inlined_call_operand.vmem [shape: bf16[96,32], index: 9, kind: input, shape index: {}]   ;;  %s1489_s10 = inlined_call_operand.vmem [shape: f32[1,32], index: 10, kind: input, shape index: {}]   ;;  %s1490_s11 = inlined_call_operand.vmem [shape: bf16[32,16], index: 11, kind: input, shape index: {}]   ;;  %s1491_s12 = inlined_call_operand.vmem [shape: f32[1,16], index: 12, kind: input, shape index: {}]   ;;  %s1492_s13 = inlined_call_operand.vmem [shape: f32[2,1,2], index: 13, kind: output, shape index: {}]  }
   0x1 LB: > { %s1087_s26 = sadd.s32 4294967295, %s1235_s25   ;;  %p1091_p0 = scmp.ge.s32.totalorder %s1235_s25, 1  ;;  %s1235_s25 = sphi %s1313_s25, %s23_s25  }
   0x2   : > { %p441_p1 = scmp.lt.s32.totalorder %s1235_s25, 3 }
   0x4   : > { %p442_p2 = pnand %p1091_p0, %p441_p1 }
   0x5   : > { %p507_p3 = scmp.lt.s32.totalorder (!%p442_p2), %s1087_s26, 1  ;;  %v542_v0 = vlaneseq (!%p442_p2)  ;;  %v1237_v1 = vmov (!%p442_p2), 0   ;;  %v1238_v15 = vmov (!%p442_p2), 0.0   ;;  %v1215_v16 = vld [vmem:[%s1486_s7] sm:$0xff] (!%p442_p2)   ;;  %s1239_s23 = smov (!%p442_p2), 16   ;;  %v1216_v17 = vld [vmem:[%s1486_s7 + $0x8] sm:$0xff] (!%p442_p2)  }
   0x6   : > { %445 = sbr.rel (%p442_p2) target bundleno = 1177 (0x499), region = 72  ;;  %1198 = vset.pattern.permute.xlu0 (!%p442_p2), %v1237_v1  ;;  %1199 = vset.pattern.permute.xlu1 (!%p442_p2), %v1237_v1  ;;  %vm1240_vm0 = vmmov (!%p442_p2), 0   ;;  %vm604_vm1 = vcmask (!%p442_p2), 130048   ;;  %vm631_vm2 = vcmask (!%p442_p2), 261120   ;;  %v1217_v55 = vld [vmem:[%s1488_s9] sm:$0xff] (!%p442_p2)   ;;  %v1218_v56 = vld [vmem:[%s1488_s9 + $0x8] sm:$0xff] (!%p442_p2)  }
   0x7   : > { %v1323_v2 = vshrl.u32 (!%p442_p2), %v542_v0, 7  ;;  %1148 = vmatprep.subr.bf16.mxu0 (!%p442_p2), %v1238_v15  ;;  %1156 = vmatprep.subr.bf16.mxu1 (!%p442_p2), %v1238_v15  ;;  %v1219_v57 = vld [vmem:[%s1488_s9 + $0x10] sm:$0xff] (!%p442_p2)   ;;  %v1220_v58 = vld [vmem:[%s1488_s9 + $0x18] sm:$0xff] (!%p442_p2)   ;;  %v1100_v61 = vld [vmem:[%s1487_s8] ss:$0 sm:$0xff] (!%p442_p2)  ;;  %s1241_s22 = smov (!%p442_p2), 32  }
   0x8   : > { %1149 = vmatpush3.bf16.msra.mxu0 (!%p442_p2), %v1215_v16  ;;  %1152 = vmatprep.mubr.msk.bf16.mxu0 (!%p442_p2), %vm1240_vm0, %v1238_v15  ;;  %vm762_vm7 = vcmask (!%p442_p2), 523264   ;;  %vm808_vm8 = vcmask (!%p442_p2), 785408   ;;  %vm973_vm9 = vcmask (!%p442_p2), 7168   ;;  %vm975_vm10 = vcmask (!%p442_p2), 8192  }
   0x9   : > { %v1337_v6 = vsub.s32 (!%p442_p2), 0, %v1323_v2  ;;  %1150 = vmatprep.subr.bf16.mxu0 (!%p442_p2), %v1238_v15  ;;  %1168 = vmatprep.mubr.msk.bf16.mxu1 (!%p442_p2), %vm1240_vm0, %v1238_v15  ;;  %vm729_vm3 = vcmp.lt.s32.totalorder (!%p442_p2), %v1323_v2, 7  ;;  %vm712_vm5 = vcmp.lt.s32.totalorder (!%p442_p2), %v1323_v2, 1  ;;  %vm715_vm6 = vcmp.ge.s32.totalorder (!%p442_p2), %v1323_v2, 1 }
   0xa   : > { %1157 = vmatpush3.bf16.msra.mxu1 (!%p442_p2), %v1217_v55 }
   0xb   : > { %1158 = vmatprep.subr.bf16.mxu1 (!%p442_p2), %v1238_v15 }
   0xc   : > { %1151 = vmatpush3.bf16.msra.mxu0 (!%p442_p2), %v1216_v17 }
   0xd   : > { %s1494_s26 = smov (!%p507_p3, %s1087_s26), 1  ;;  %1172 = vmatprep.subr.bf16.mxu0 %v1238_v15 }
   0xe   : > { %s1122_s27 = sshll.u32 %s1494_s26, 4  ;;  %s524_s30 = scalar_lea.vmem %s1482_s3, %s1494_s26  ;;  %1159 = vmatpush3.bf16.msra.mxu1 %v1218_v56 }
   0xf   : > { %s535_s16 = scalar_lea.vmem %s1485_s6, %s1122_s27  ;;  %v545_v3 = vld [vmem:[%s524_s30] sm:$0x1]  ;;  %s1334_s17 = sshll.u32 %s1494_s26, 3  ;;  %1160 = vmatprep.subr.bf16.mxu1 %v1238_v15 }
  0x10   : > { %v540_v4 = vld [vmem:[%s535_s16] sm:$0xff]  ;;  %v570_v5 = vmul.f32 0.9999, %v545_v3  ;;  %s521_s20 = scalar_lea.vmem %s1481_s2, %s1334_s17  ;;  %v541_v8 = vld [vmem:[%s535_s16 + $0x8] sm:$0xff]  ;;  %v587_v14 = vrot.slane %v545_v3, %v1337_v6  ;;  %s511_s30 = scalar_lea.vmem %s1479_s0, %s1334_s17 }
  0x11   : > { %560 = vperm.xlu0 %1198, %v540_v4   ;;  %v1132_v7 = vld [vmem:[%s521_s20] sm:$0xff]   ;;  %s516_s16 = scalar_lea.vmem %s1480_s1, %s1334_s17  ;;  %s530_s29 = scalar_lea.vmem %s1484_s5, %s1494_s26 }
  0x12   : > { %v571_v9 = vsub.f32 1.0, %v570_v5  ;;  %v1133_v10 = vunpack.c.l.bf16 %v1132_v7  ;;  %v1134_v11 = vunpack.c.h.bf16 %v1132_v7  ;;  %v1124_v18 = vld [vmem:[%s511_s30] sm:$0xff]   ;;  %1161 = vmatpush3.bf16.msra.mxu1 %v1219_v57  ;;  %s527_s15 = scalar_lea.vmem %s1483_s4, %s1494_s26  ;;  %s538_s20 = scalar_lea.vmem %s1492_s13, %s1494_s26 }
  0x13   : > { %v1363_v19 = vunpack.c.l.bf16 %v1124_v18  ;;  %v1365_v20 = vunpack.c.h.bf16 %v1124_v18  ;;  %v1376_v31 = vld [vmem:[%s516_s16] sm:$0xff]   ;;  %1162 = vmatprep.subr.bf16.mxu1 %v1238_v15 }
  0x14   : > { %v576_v12 = vrot.slane %v571_v9, %v1337_v6  ;;  %v1200_v13 = vpack.i.bf16 %v1134_v11, %v1133_v10  ;;  %v1129_v34 = vunpack.c.l.bf16 %v1376_v31  ;;  %v1130_v35 = vunpack.c.h.bf16 %v1376_v31  ;;  %v685_v59 = vld [vmem:[%s530_s29] sm:$0x1] }
  0x15   : > { %565 = vperm.xlu0 %1198, %v541_v8   ;;  %v950_v21 = vsub.f32 %v1363_v19, %v1133_v10  ;;  %v951_v22 = vsub.f32 %v1365_v20, %v1134_v11  ;;  %v686_v60 = vunpack.c.l.bf16 %v685_v59  ;;  %v1104_v63 = vld [vmem:[%s527_s15] ss:$0 sm:$0xff] }
  0x16   : > { %578 = vperm.xlu1 %1199, %v576_v12   ;;  %1163 = vmatpush3.bf16.msra.mxu1 %v1220_v58  ;;  %v1221_v12 = vld [vmem:[%s1488_s9 + $0x20] sm:$0xff]  }
  0x17   : > { %v952_v23 = vmul.f32 %v950_v21, %v950_v21  ;;  %v953_v24 = vmul.f32 %v951_v22, %v951_v22  ;;  %1164 = vmatprep.subr.bf16.mxu1 %v1238_v15  ;;  %v690_v1 = vrot.slane %v686_v60, %v1337_v6  ;;  %v1222_v6 = vld [vmem:[%s1488_s9 + $0x28] sm:$0xff]  }
  0x19   : > { %1201 = vrot.lane.b32.xlu0 %v1200_v13, %s1239_s23  ;;  %v954_v25 = vadd.f32 1.837877, %v952_v23  ;;  %v955_v26 = vadd.f32 1.837877, %v953_v24  ;;  %s1242_s23 = smov 64  }
  0x1a   : > { %589 = vperm.xlu1 %1199, %v587_v14   ;;  %1165 = vmatpush3.bf16.msra.mxu1 %v1221_v12  ;;  %v544_v14 = vadd.s32 8, %v1323_v2  ;;  %v1223_v2 = vld [vmem:[%s1490_s11] sm:$0xff]  }
  0x1b   : > { %v956_v27 = vmul.f32 0.5, %v954_v25  ;;  %v957_v29 = vmul.f32 0.5, %v955_v26  ;;  %1166 = vmatprep.subr.bf16.mxu1 %v1238_v15 }
  0x1c   : > { %vm735_vm4 = vcmp.lt.s32.totalorder %v544_v14, 15 }
  0x1e   : > { %1167 = vmatpush3.bf16.msra.mxu1 %v1222_v6 }
  0x90   : > { %v1373_v28 = vpop.permute.xlu0 %560 }
  0x91   : > { %v958_v30 = vmul.f32 %v956_v27, %v1373_v28  ;;  %v568_v39 = vmul.f32 %v1363_v19, %v1373_v28 }
  0x93   : > { %v960_v37 = vsel %vm604_vm1, %v958_v30, 0.0 }
  0x94   : > { %v1378_v32 = vpop.permute.xlu0 %565 }
  0x95   : > { %v579_v33 = vpop.permute.xlu1 %578  ;;  %v959_v36 = vmul.f32 %v957_v29, %v1378_v32  ;;  %v569_v40 = vmul.f32 %v1365_v20, %v1378_v32 }
  0x96   : > { %v581_v43 = vmul.f32 %v1129_v34, %v579_v33  ;;  %v582_v44 = vmul.f32 %v1130_v35, %v579_v33 }
  0x97   : > { %v961_v38 = vsel %vm604_vm1, %v959_v36, 0.0 }
  0x98   : > { %v1202_v41 = vpop.permute.xlu0 %1201  ;;  %v1389_v42 = vadd.f32 %v961_v38, %v960_v37 }
  0x99   : > { %v590_v45 = vpop.permute.xlu1 %589  ;;  %v1204_v48 = vunpack.i.h.bf16 %v1202_v41  ;;  %v1203_v49 = vunpack.i.l.bf16 %v1202_v41 }
  0x9a   : > { %v592_v46 = vmul.f32 %v590_v45, %v568_v39  ;;  %v593_v47 = vmul.f32 %v590_v45, %v569_v40 }
  0x9c   : > { %v594_v50 = vadd.f32 %v592_v46, %v581_v43  ;;  %v595_v51 = vadd.f32 %v593_v47, %v582_v44 }
  0x9e   : > { %v605_v52 = vsel %vm604_vm1, %v594_v50, %v1203_v49  ;;  %v606_v53 = vsel %vm604_vm1, %v595_v51, %v1204_v48  ;;  %v1105_v50 = vld [vmem:[%s1489_s10] ss:$0 sm:$0xff] }
  0x9f   : > { %v607_v54 = vpack.c.bf16 %v606_v53, %v605_v52 }
  0xa1   : > { %1153 = vmatmul.mubr.msk.bf16.vlgmr.msra.gmra.mrb[0].mxu0 %vm631_vm2, %v607_v54 }
  0xa2   : > { %1176 = vmatprep.mubr.msk.bf16.mxu0 %vm1240_vm0, %v1238_v15  ;;  %1173 = vmatpush3.bf16.msra.mxu0 %v1223_v2 }
  0xa3   : > { %1174 = vmatprep.subr.bf16.mxu0 %v1238_v15 }
 0x174   : > { %v669_v62 = vpop.f32.mrb[0].mxu0 }
 0x175   : > { %v670_v0 = vadd.f32 %v1100_v61, %v669_v62  ;;  %v1154_v3 = vpop.f32.mrb[1].mxu0  ;;  %v1113_v62 = vld [vmem:[%s1491_s12] ss:$0 sm:$0xff] }
 0x176   : > { %v672_v4 = vpop.f32.mrb[2].mxu0 }
 0x177   : > { %v683_v5 = vadd.f32 %v1104_v63, %v670_v0  ;;  %v673_v7 = vadd.f32 %v1100_v61, %v672_v4  ;;  %v1155_v8 = vpop.f32.mrb[3].mxu0  ;;  %v927_v61 = vmul.f32 0.9999, %v1129_v34 }
 0x179   : > { %v691_v9 = vadd.f32 %v690_v1, %v683_v5  ;;  %v684_v10 = vadd.f32 %v1104_v63, %v673_v7  ;;  %v928_v63 = vmul.f32 0.9999, %v1130_v35  ;;  %v929_v3 = vsub.f32 %v1363_v19, %v927_v61 }
 0x17b   : > { %1225 = vtanh.f32 %v691_v9  ;;  %v692_v11 = vadd.f32 %v690_v1, %v684_v10  ;;  %v930_v9 = vsub.f32 %v1365_v20, %v928_v63 }
 0x17d   : > { %1227 = vtanh.f32 %v692_v11 }
 0x185   : > { %v1226_v13 = vpop.eup %1225 }
 0x186   : > { %v695_v16 = vmul.f32 %v1226_v13, %v1373_v28 }
 0x187   : > { %v1228_v17 = vpop.eup %1227 }
 0x188   : > { %v696_v18 = vmul.f32 %v1228_v17, %v1378_v32  ;;  %v727_v21 = vrot.slane %v695_v16, 1  ;;  %v710_v24 = vrot.slane %v695_v16, 7 }
 0x18a   : > { %v1205_v22 = vpack.i.bf16 %v696_v18, %v695_v16  ;;  %v728_v23 = vrot.slane %v696_v18, 1  ;;  %v711_v25 = vrot.slane %v696_v18, 7 }
 0x18c   : > { %1206 = vrot.lane.b32.xlu1 %v1205_v22, %s1241_s22  ;;  %v730_v26 = vsel %vm729_vm3, %v727_v21, %v728_v23  ;;  %v731_v27 = vsel %vm729_vm3, %v728_v23, %v727_v21  ;;  %v713_v29 = vsel %vm712_vm5, %v710_v24, %v711_v25  ;;  %v714_v30 = vsel %vm712_vm5, %v711_v25, %v710_v24 }
 0x18d   : > { %v743_v33 = vsel %vm735_vm4, %v731_v27, 0.0  ;;  %v725_v41 = vsel %vm715_vm6, %v714_v30, 0.0 }
 0x18e   : > { %v1210_v36 = vpack.i.bf16 %v743_v33, %v730_v26 }
 0x190   : > { %1211 = vrot.lane.b32.xlu0 %v1210_v36, %s1242_s23 }
 0x1af   : > { %963 = vadd.xlane.f32.xlu0 %v1389_v42  ;;  %v1224_v42 = vld [vmem:[%s1490_s11 + $0x8] sm:$0xff]  }
 0x1b0   : > { %1175 = vmatpush3.bf16.msra.mxu0 %v1224_v42 }
 0x1fe   : > { %v1207_v37 = vpop.permute.xlu1 %1206 }
 0x1ff   : > { %v1209_v38 = vunpack.i.h.bf16 %v1207_v37  ;;  %v1208_v39 = vunpack.i.l.bf16 %v1207_v37 }
 0x201   : > { %v760_v45 = vsel %vm631_vm2, %v725_v41, %v1208_v39  ;;  %v761_v46 = vsel %vm631_vm2, %v713_v29, %v1209_v38 }
 0x202   : > { %v1212_v40 = vpop.permute.xlu0 %1211 }
 0x203   : > { %v1214_v43 = vunpack.i.h.bf16 %v1212_v40  ;;  %v1213_v44 = vunpack.i.l.bf16 %v1212_v40 }
 0x205   : > { %v763_v47 = vsel %vm762_vm7, %v760_v45, %v1213_v44  ;;  %v764_v48 = vsel %vm762_vm7, %v761_v46, %v1214_v43 }
 0x206   : > { %v765_v49 = vpack.c.bf16 %v764_v48, %v763_v47 }
 0x208   : > { %1169 = vmatmul.mubr.msk.bf16.vlgmr.msra.gmra.mrb[0].mxu1 %vm808_vm8, %v765_v49 }
 0x23c   : > { %v964_v17 = vpop.xlane.xlu0 %963 }
 0x23d   : > { %v965_v18 = vrot.slane %v964_v17, 4 }
 0x23f   : > { %v966_v20 = vadd.f32 %v965_v18, %v964_v17 }
 0x241   : > { %v967_v21 = vrot.slane %v966_v20, 2 }
 0x243   : > { %v968_v25 = vadd.f32 %v967_v21, %v966_v20 }
 0x2db   : > { %v846_v51 = vpop.f32.mrb[0].mxu1 }
 0x2dc   : > { %v847_v52 = vadd.f32 %v1105_v50, %v846_v51  ;;  %v1170_v53 = vpop.f32.mrb[1].mxu1 }
 0x2dd   : > { %v849_v54 = vpop.f32.mrb[2].mxu1 }
 0x2de   : > { %v853_v55 = vmax.f32 %v847_v52, 0.0  ;;  %v850_v56 = vadd.f32 %v1105_v50, %v849_v54  ;;  %v1171_v57 = vpop.f32.mrb[3].mxu1 }
 0x2e0   : > { %v854_v58 = vmax.f32 %v850_v56, 0.0  ;;  %v855_v59 = vmul.f32 %v853_v55, %v1373_v28 }
 0x2e2   : > { %v856_v15 = vmul.f32 %v854_v58, %v1378_v32 }
 0x2e4   : > { %v857_v60 = vpack.c.bf16 %v856_v15, %v855_v59 }
 0x2e6   : > { %1177 = vmatmul.mubr.msk.bf16.vlgmr.msra.gmra.mrb[4].mxu0 %vm631_vm2, %v857_v60 }
 0x3b9   : > { %v918_v0 = vpop.f32.mrb[4].mxu0 }
 0x3ba   : > { %v919_v1 = vadd.f32 %v1113_v62, %v918_v0  ;;  %v1178_v4 = vpop.f32.mrb[5].mxu0 }
 0x3bb   : > { %v921_v5 = vpop.f32.mrb[6].mxu0 }
 0x3bc   : > { %v925_v7 = vmul.f32 %v919_v1, %v1373_v28  ;;  %v922_v8 = vadd.f32 %v1113_v62, %v921_v5  ;;  %v1179_v10 = vpop.f32.mrb[7].mxu0 }
 0x3be   : > { %v931_v34 = vsub.f32 %v925_v7, %v929_v3  ;;  %v926_v11 = vmul.f32 %v922_v8, %v1378_v32 }
 0x3c0   : > { %v933_v12 = vmul.f32 %v931_v34, %v931_v34  ;;  %v932_v6 = vsub.f32 %v926_v11, %v930_v9 }
 0x3c2   : > { %v934_v13 = vmul.f32 %v932_v6, %v932_v6  ;;  %v935_v31 = vmul.f32 %v933_v12, %v1373_v28  ;;  %v969_v28 = vrot.slane %v968_v25, 1 }
 0x3c4   : > { %v936_v35 = vmul.f32 %v934_v13, %v1378_v32  ;;  %v937_v19 = vsel %vm604_vm1, %v935_v31, 0.0  ;;  %v970_v30 = vadd.f32 %v969_v28, %v968_v25 }
 0x3c6   : > { %v938_v14 = vsel %vm604_vm1, %v936_v35, 0.0 }
 0x3c7   : > { %v939_v16 = vadd.f32 %v938_v14, %v937_v19 }
 0x3c9   : > { %940 = vadd.xlane.f32.xlu1 %v939_v16 }
 0x456   : > { %v941_v22 = vpop.xlane.xlu1 %940 }
 0x457   : > { %v942_v23 = vrot.slane %v941_v22, 4 }
 0x459   : > { %v943_v24 = vadd.f32 %v942_v23, %v941_v22 }
 0x45b   : > { %v944_v26 = vrot.slane %v943_v24, 2 }
 0x45d   : > { %v945_v27 = vadd.f32 %v944_v26, %v943_v24 }
 0x45f   : > { %v946_v29 = vrot.slane %v945_v27, 1 }
 0x461   : > { %v947_v32 = vadd.f32 %v946_v29, %v945_v27 }
 0x463   : > { %1180 = vpush %v947_v32 }
 0x464   : > { %1182 = vpush %v970_v30 }
 0x494   : > { %s1181_s17 = spop %1180 }
 0x495   : > { %v949_v33 = vstv %s1181_s17  ;;  %s1183_s21 = spop %1182 }
 0x496   : > { %v972_v36 = vstv %s1183_s21 }
 0x497   : > { %v974_v37 = vsel %vm973_vm9, %v949_v33, %v972_v36 }
 0x498   : > { %976 = vst.msk [vmem:[%s538_s20] sm:$0x1] %vm975_vm10, %v974_v37 }
 0x499 PF: > { %s23_s25 = sadd.s32 1, %s1235_s25  }
 0x49a   : > { %p20_p4 = scmp.ge.s32.totalorder %s23_s25, 4  }
 0x49c   :  { %22 = sbr.rel (!%p20_p4) target bundleno = 1 (0x1), region = 120 }

// kernel: _lambda_.7
= control target key start
LH: loop header
LB: loop body
LE: loop exit
PB: predicated region body
PF: predicated region fallthrough
CT: control target
= control target key end

     0   :  { %v704_v2 = vmov 0   ;;  %vm94_vm0 = vcmask 261120   ;;  %s877_s0 = inlined_call_operand.vmem [shape: f32[2,32], index: 0, kind: input, shape index: {}]   ;;  %s878_s1 = inlined_call_operand.vmem [shape: bf16[32,512], index: 1, kind: input, shape index: {}]   ;;  %s879_s2 = inlined_call_operand.vmem [shape: f32[1,512], index: 2, kind: input, shape index: {}]   ;;  %s880_s3 = inlined_call_operand.vmem [shape: bf16[512,4], index: 3, kind: input, shape index: {}]   ;;  %s881_s4 = inlined_call_operand.vmem [shape: f32[1,4], index: 4, kind: input, shape index: {}]   ;;  %s882_s5 = inlined_call_operand.hbm [shape: f32[2,4], index: 5, kind: output, shape index: {}]  }
   0x1   :  { %v636_v0 = vld [vmem:[%s878_s1 + $0x4] ss:$16 sps:$4 sm:$0xff]   ;;  %v638_v1 = vld [vmem:[%s878_s1 + $0xc] ss:$16 sps:$4 sm:$0xff]   ;;  %130 = vmatprep.mubr.bf16.mxu0 %v704_v2  ;;  %171 = vmatprep.mubr.bf16.mxu1 %v704_v2  ;;  %v640_v3 = vld [vmem:[%s878_s1] ss:$16 sps:$4 sm:$0xff]  }
   0x2   :  { %98 = vmatprep.subr.bf16.mxu0 %v636_v0  ;;  %v641_v4 = vld [vmem:[%s878_s1 + $0x8] ss:$16 sps:$4 sm:$0xff]   ;;  %139 = vmatprep.subr.bf16.mxu1 %v638_v1  ;;  %v642_v5 = vld [vmem:[%s878_s1 + $0x24] ss:$16 sps:$4 sm:$0xff]   ;;  %v644_v6 = vld [vmem:[%s878_s1 + $0x2c] ss:$16 sps:$4 sm:$0xff]  }
   0x3   :  { %99 = vmatpush1.bf16.msra.mxu0 %v640_v3  ;;  %140 = vmatpush1.bf16.msra.mxu1 %v641_v4  ;;  %v646_v7 = vld [vmem:[%s878_s1 + $0x20] ss:$16 sps:$4 sm:$0xff]   ;;  %v647_v8 = vld [vmem:[%s878_s1 + $0x28] ss:$16 sps:$4 sm:$0xff]  }
   0x4   :  { %100 = vmatprep.subr.bf16.mxu0 %v642_v5  ;;  %v22_v9 = vld [vmem:[%s877_s0] sm:$0x3]  ;;  %141 = vmatprep.subr.bf16.mxu1 %v644_v6  ;;  %v652_v15 = vld [vmem:[%s880_s3 + $0x48] sm:$0xff]   ;;  %v656_v19 = vld [vmem:[%s880_s3 + $0x50] sm:$0xff]  }
   0x5   :  { %v648_v10 = vld [vmem:[%s880_s3 + $0x40] sm:$0xff]   ;;  %v23_v11 = vpack.c.bf16 %v22_v9, %v22_v9  ;;  %v653_v16 = vld [vmem:[%s880_s3 + $0xc8] sm:$0xff]   ;;  %v657_v20 = vld [vmem:[%s880_s3 + $0xd0] sm:$0xff]  }
   0x6   :  { %v649_v12 = vld [vmem:[%s880_s3 + $0xc0] sm:$0xff]   ;;  %v654_v17 = vld [vmem:[%s880_s3 + $0x8] sm:$0xff]   ;;  %v658_v21 = vld [vmem:[%s880_s3 + $0x10] sm:$0xff]  }
   0x7   :  { %101 = vmatpush1.bf16.msra.mxu0 %v646_v7  ;;  %142 = vmatpush1.bf16.msra.mxu1 %v647_v8  ;;  %v650_v13 = vld [vmem:[%s880_s3] sm:$0xff]   ;;  %v655_v18 = vld [vmem:[%s880_s3 + $0x88] sm:$0xff]   ;;  %v659_v22 = vld [vmem:[%s880_s3 + $0x90] sm:$0xff]  }
   0x8   :  { %590 = vmatprep.subr.bf16.mxu0 %v648_v10  ;;  %612 = vmatprep.subr.bf16.mxu1 %v649_v12  ;;  %v651_v14 = vld [vmem:[%s880_s3 + $0x80] sm:$0xff]   ;;  %v660_v23 = vld [vmem:[%s880_s3 + $0x58] sm:$0xff]   ;;  %v668_v31 = vld [vmem:[%s880_s3 + $0x68] sm:$0xff]  }
   0x9   :  { %v661_v24 = vld [vmem:[%s880_s3 + $0xd8] sm:$0xff]   ;;  %v664_v27 = vld [vmem:[%s880_s3 + $0x60] sm:$0xff]   ;;  %v669_v32 = vld [vmem:[%s880_s3 + $0xe8] sm:$0xff]  }
   0xa   :  { %555 = vmatmul.mubr.msk.bf16.vlgmr.msra.gmra.mrb[0].mxu0 %vm94_vm0, %v23_v11  ;;  %556 = vmatmul.mubr.msk.bf16.vlgmr.msra.gmra.mrb[0].mxu1 %vm94_vm0, %v23_v11  ;;  %v662_v25 = vld [vmem:[%s880_s3 + $0x18] sm:$0xff]   ;;  %v665_v28 = vld [vmem:[%s880_s3 + $0xe0] sm:$0xff]   ;;  %v670_v33 = vld [vmem:[%s880_s3 + $0x28] sm:$0xff]  }
   0xb   :  { %591 = vmatpush3.bf16.msra.mxu0 %v650_v13  ;;  %613 = vmatpush3.bf16.msra.mxu1 %v651_v14  ;;  %v663_v26 = vld [vmem:[%s880_s3 + $0x98] sm:$0xff]   ;;  %v666_v29 = vld [vmem:[%s880_s3 + $0x20] sm:$0xff]   ;;  %v671_v34 = vld [vmem:[%s880_s3 + $0xa8] sm:$0xff]  }
   0xc   :  { %592 = vmatprep.subr.bf16.mxu0 %v652_v15  ;;  %614 = vmatprep.subr.bf16.mxu1 %v653_v16  ;;  %v667_v30 = vld [vmem:[%s880_s3 + $0xa0] sm:$0xff]  }
   0xf   :  { %593 = vmatpush3.bf16.msra.mxu0 %v654_v17  ;;  %615 = vmatpush3.bf16.msra.mxu1 %v655_v18 }
  0x10   :  { %594 = vmatprep.subr.bf16.mxu0 %v656_v19  ;;  %616 = vmatprep.subr.bf16.mxu1 %v657_v20 }
  0x13   :  { %595 = vmatpush3.bf16.msra.mxu0 %v658_v21  ;;  %617 = vmatpush3.bf16.msra.mxu1 %v659_v22 }
  0x14   :  { %596 = vmatprep.subr.bf16.mxu0 %v660_v23  ;;  %618 = vmatprep.subr.bf16.mxu1 %v661_v24 }
  0x17   :  { %597 = vmatpush3.bf16.msra.mxu0 %v662_v25  ;;  %619 = vmatpush3.bf16.msra.mxu1 %v663_v26 }
  0x18   :  { %598 = vmatprep.subr.bf16.mxu0 %v664_v27  ;;  %620 = vmatprep.subr.bf16.mxu1 %v665_v28 }
  0x1b   :  { %599 = vmatpush3.bf16.msra.mxu0 %v666_v29  ;;  %621 = vmatpush3.bf16.msra.mxu1 %v667_v30 }
  0x1c   :  { %600 = vmatprep.subr.bf16.mxu0 %v668_v31  ;;  %622 = vmatprep.subr.bf16.mxu1 %v669_v32 }
  0x1f   :  { %601 = vmatpush3.bf16.msra.mxu0 %v670_v33  ;;  %623 = vmatpush3.bf16.msra.mxu1 %v671_v34 }
  0x20   :  { %10 = vsyncpa [#allocation3], 0  ;;  %v672_v35 = vld [vmem:[%s880_s3 + $0x70] sm:$0xff]   ;;  %v676_v39 = vld [vmem:[%s880_s3 + $0x78] sm:$0xff]   ;;  %v34_v43 = vlaneseq  ;;  %s705_s21 = smov [#allocation2]   ;;  %vm531_vm1 = vcmask 25600  }
  0x21   :  { %v673_v36 = vld [vmem:[%s880_s3 + $0xf0] sm:$0xff]   ;;  %602 = vmatprep.subr.bf16.mxu0 %v672_v35  ;;  %v677_v40 = vld [vmem:[%s880_s3 + $0xf8] sm:$0xff]   ;;  %v32_v47 = vld [vmem:[%s879_s2] sm:$0xf]  ;;  %s539_s22 = sshll.u32 %s705_s21, 4  ;;  %s540_s22 = int_to_ptr.vmem [resolvable:$true] %s539_s22 }
  0x22   :  { %v674_v37 = vld [vmem:[%s880_s3 + $0x30] sm:$0xff]   ;;  %624 = vmatprep.subr.bf16.mxu1 %v673_v36  ;;  %v678_v41 = vld [vmem:[%s880_s3 + $0x38] sm:$0xff]   ;;  %v35_v44 = vshrl.u32 %v34_v43, 7  ;;  %v557_v12 = vld [vmem:[%s881_s4] ss:$0 sm:$0xff]  ;;  %s680_s23 = scalar_lea.vmem %s540_s22, 32  ;;  %p685_p1 = scmp.lt.s32.totalorder %s540_s22, %s540_s22 }
  0x23   :  { %v675_v38 = vld [vmem:[%s880_s3 + $0xb0] sm:$0xff]   ;;  %603 = vmatpush3.bf16.msra.mxu0 %v674_v37  ;;  %v679_v42 = vld [vmem:[%s880_s3 + $0xb8] sm:$0xff]   ;;  %p681_p0 = scmp.ne.s32.totalorder %s540_s22, %s680_s23  ;;  %p686_p2 = scmp.lt.s32.totalorder %s680_s23, %s680_s23 }
  0x24   :  { %625 = vmatpush3.bf16.msra.mxu1 %v675_v38  ;;  %604 = vmatprep.subr.bf16.mxu0 %v676_v39  ;;  %v36_v45 = vsub.s32 0, %v35_v44  ;;  %v44_v46 = vsub.s32 2, %v35_v44  ;;  %v40_v48 = vsub.s32 1, %v35_v44  ;;  %v48_v49 = vsub.s32 3, %v35_v44 }
  0x25   :  { %626 = vmatprep.subr.bf16.mxu1 %v677_v40  ;;  %p687_p3 = por %p686_p2, %p685_p1 }
  0x26   :  { %v37_v50 = vrot.slane %v32_v47, %v36_v45  ;;  %v45_v51 = vrot.slane %v32_v47, %v44_v46  ;;  %v41_v52 = vrot.slane %v32_v47, %v40_v48  ;;  %v49_v53 = vrot.slane %v32_v47, %v48_v49 }
  0x27   :  { %605 = vmatpush3.bf16.msra.mxu0 %v678_v41  ;;  %p688_p4 = pnand %p687_p3, %p681_p0 }
  0x28   :  { %627 = vmatpush3.bf16.msra.mxu1 %v679_v42 }
  0xdd   :  { %v132_v54 = vpop.f32.mrb[0].mxu0  ;;  %v173_v55 = vpop.f32.mrb[0].mxu1 }
  0xde   :  { %v133_v56 = vadd.f32 %v132_v54, %v37_v50  ;;  %v174_v57 = vadd.f32 %v173_v55, %v45_v51  ;;  %v134_v58 = vpop.f32.mrb[1].mxu0  ;;  %v175_v59 = vpop.f32.mrb[1].mxu1 }
  0xdf   :  { %v135_v60 = vadd.f32 %v134_v58, %v41_v52  ;;  %v176_v61 = vadd.f32 %v175_v59, %v49_v53  ;;  %v136_v62 = vpop.f32.mrb[2].mxu0  ;;  %v177_v63 = vpop.f32.mrb[2].mxu1 }
  0xe0   :  { %v180_v0 = vmax.f32 %v133_v56, 0.0  ;;  %v182_v1 = vmax.f32 %v174_v57, 0.0  ;;  %v137_v2 = vpop.f32.mrb[3].mxu0  ;;  %v178_v3 = vpop.f32.mrb[3].mxu1 }
  0xe1   :  { %v181_v4 = vmax.f32 %v135_v60, 0.0  ;;  %v183_v5 = vmax.f32 %v176_v61, 0.0 }
  0xe2   :  { %v186_v6 = vpack.c.bf16 %v182_v1, %v182_v1  ;;  %v184_v9 = vpack.c.bf16 %v180_v0, %v180_v0 }
  0xe3   :  { %v185_v7 = vpack.c.bf16 %v181_v4, %v181_v4  ;;  %v187_v8 = vpack.c.bf16 %v183_v5, %v183_v5 }
  0xe5   :  { %483 = vmatprep.mubr.bf16.mxu0 %v185_v7  ;;  %523 = vmatprep.mubr.bf16.mxu1 %v187_v8 }
  0xe6   :  { %484 = vmatmul.mubr.bf16.vlgmr.msra.gmra.mrb[4].mxu0 %v184_v9  ;;  %524 = vmatmul.mubr.bf16.vlgmr.msra.gmra.mrb[4].mxu1 %v186_v6 }
 0x1b9   :  { %v606_v10 = vpop.f32.mrb[4].mxu0  ;;  %v628_v11 = vpop.f32.mrb[4].mxu1 }
 0x1ba   :  { %v607_v13 = vpop.f32.mrb[5].mxu0  ;;  %v629_v14 = vpop.f32.mrb[5].mxu1 }
 0x1bb   :  { %v608_v15 = vadd.f32 %v607_v13, %v606_v10  ;;  %v630_v16 = vadd.f32 %v629_v14, %v628_v11  ;;  %v609_v17 = vpop.f32.mrb[6].mxu0  ;;  %v631_v18 = vpop.f32.mrb[6].mxu1 }
 0x1bc   :  { %v610_v19 = vpop.f32.mrb[7].mxu0  ;;  %v632_v20 = vpop.f32.mrb[7].mxu1 }
 0x1bd   :  { %v486_v21 = vadd.f32 %v608_v15, %v557_v12 }
 0x1bf   :  { %v526_v22 = vadd.f32 %v630_v16, %v486_v21 }
 0x1c1   :  { %532 = vst.msk [vmem:[#allocation2] sm:$0x3] %vm531_vm1, %v526_v22 }
 0x1c2   :  { %691 = shalt.err (!%p688_p4)
}
 0x1c3   :  { %s692_s25 = scalar_lea.hbm %s882_s5, 32 }
 0x1c4   :  { %p693_p5 = scmp.ne.s32.totalorder %s882_s5, %s692_s25  ;;  %p696_p6 = scmp.lt.u32.totalorder %s692_s25, %s882_s5 }
 0x1c6   :  { %p698_p7 = pnand %p696_p6, %p693_p5 }
 0x1c8   :  { %701 = shalt.err (!%p698_p7)
}
 0x1c9   :  { %542 = dma.vmem_to_hbm [thread:$0]  %s540_s22, 32, %s882_s5, [#allocation3]  }
 0x1ca   :  { %702 = dma.done.wait [#allocation3], 32  }
 0x1cb   :  { %703 = vsyncadd [#allocation3], 4294967264 }
 0x1cc   :  { %546 = vsyncpa [#allocation3], 1 }

</bundles_post_ra>
